<compile_context>
chip_gen: v6e
topology: v6e:2x2x1
jax: 0.10.0
libtpu: 0.0.40
codegen_flags: <defaults>
</compile_context>

<pallas_src>
import jax
import jax.numpy as jnp
import numpy as np
from jax import lax
from jax.experimental import pallas as pl
from jax.experimental.pallas import tpu as pltpu

EPS = 1e-5
LEAK = 0.01
LANE = 128

# VMEM sizing: keep the per-step working set comfortably below the scoped limit we request.
# 48 MiB is acceptable on v5e/v6e (128 MiB physical) and leaves headroom on v7x (64 MiB).
_VMEM_LIMIT_BYTES = 48 * 1024 * 1024
_VMEM_WORKING_BUDGET = 36 * 1024 * 1024


# ---------------------------------------------------------------------------
# Pass 1: InstanceNorm statistics -> folded per-(instance, channel) scale/shift
# ---------------------------------------------------------------------------
def instnorm_stats_kernel(x_ref, g_ref, b_ref, ss_ref, sum_sc, sq_sc):
    """Accumulate per-(instance, channel) spatial sum / sum-of-squares over s2d row tiles;
    on the last tile emit:  scale = gamma * rsqrt(var + eps),  shift = beta - mean * scale.

    x_ref: (Bb, Th, Wo, 4*Cp) f32   g_ref/b_ref: (1, Cp)   ss_ref: (Bb, 2, Cp) out
    sum_sc/sq_sc: (Bb, Cp) f32 scratch accumulators (persist across the row-tile axis)."""
    t = pl.program_id(1)
    Cp = g_ref.shape[1]

    @pl.when(t == 0)
    def _():
        sum_sc[...] = jnp.zeros_like(sum_sc)
        sq_sc[...] = jnp.zeros_like(sq_sc)

    x = x_ref[...]
    s1 = jnp.sum(jnp.sum(x, axis=1), axis=1)          # (Bb, 4*Cp)
    s2 = jnp.sum(jnp.sum(x * x, axis=1), axis=1)      # (Bb, 4*Cp)
    # fold the 4 space-to-depth phases (together they tile the full spatial plane)
    sum_sc[...] += (s1[:, 0:Cp] + s1[:, Cp:2 * Cp]
                    + s1[:, 2 * Cp:3 * Cp] + s1[:, 3 * Cp:4 * Cp])
    sq_sc[...] += (s2[:, 0:Cp] + s2[:, Cp:2 * Cp]
                   + s2[:, 2 * Cp:3 * Cp] + s2[:, 3 * Cp:4 * Cp])

    @pl.when(t == pl.num_programs(1) - 1)
    def _():
        n_pix = pl.num_programs(1) * x_ref.shape[1] * x_ref.shape[2] * 4   # = H * W
        inv_n = 1.0 / n_pix
        mean = sum_sc[...] * inv_n
        # single-pass variance (E[x^2] - mean^2); clamp guards tiny negative rounding.
        var = jnp.maximum(sq_sc[...] * inv_n - mean * mean, 0.0)
        inv = lax.rsqrt(var + EPS)
        scale = inv * g_ref[...]                       # (Bb, Cp)
        shift = b_ref[...] - mean * scale              # (Bb, Cp)
        ss_ref[...] = jnp.concatenate([scale[:, None, :], shift[:, None, :]], axis=1)


# ---------------------------------------------------------------------------
# Pass 2: normalize + LeakyReLU + stride-2 3x3 conv (tiled over s2d rows)
# ---------------------------------------------------------------------------
def _shift_cols_right(v):
    """Columns (axis 2) shifted right by one with zeros in column 0.
    (Operand for the kx=0 conv taps: output col ox reads input s2d col ox-1.)"""
    if v.shape[2] <= 1:
        return jnp.zeros_like(v)
    z = jnp.zeros_like(v[:, :, 0:1, :])
    return jnp.concatenate([z, v[:, :, :-1, :]], axis=2)


def downsample_apply_kernel(x_ref, ss_ref, w_ref, cb_ref, xact_ref, y_ref, carry_ref):
    """One s2d row tile: InstanceNorm-apply + LeakyReLU + stride-2 3x3 conv.

    x_ref:    (Bb, Th, Wo, 4*Cp)  f32  space-to-depth input tile
    ss_ref:   (Bb, 2,  Cp)        f32  per-(instance, channel) [scale; shift]
    w_ref:    (9*Cp, Cop)         bf16 the 9 non-zero tap weight blocks (wrapper layout)
    cb_ref:   (1, Cop)            f32  conv bias
    xact_ref: (Bb, Th, Wo, 4*Cp)  f32  out: LeakyReLU(InstanceNorm(x))  (s2d layout)
    y_ref:    (Bb, Th, Wo, Cop)   f32  out: stride-2 conv
    carry_ref:(Bb, 1,  Wo, 2*Cp)  bf16 scratch: previous tile's last activated s2d row,
                                       phase blocks 2:4 (the only ones the ky=0 taps read)
    """
    t = pl.program_id(1)
    Bb, Th, Wo, C4 = x_ref.shape
    Cp = C4 // 4
    Cop = y_ref.shape[3]
    M = Bb * Th * Wo

    # Row-tile halo: zero at the top of the image, else carried from the previous tile.
    # Zeroed at t == 0 of EVERY batch block -> correct under "parallel" batch sharding.
    @pl.when(t == 0)
    def _():
        carry_ref[...] = jnp.zeros_like(carry_ref)
    halo = carry_ref[...]                                   # (Bb, 1, Wo, 2*Cp) bf16

    # ---- InstanceNorm apply (pre-folded scale/shift) + LeakyReLU, one elementwise pass ----
    ss = ss_ref[...]
    scale4 = jnp.concatenate([ss[:, 0, :]] * 4, axis=-1)[:, None, None, :]   # (Bb,1,1,4Cp)
    shift4 = jnp.concatenate([ss[:, 1, :]] * 4, axis=-1)[:, None, None, :]
    xn = x_ref[...] * scale4 + shift4
    xact = jnp.where(xn >= 0, xn, LEAK * xn)
    xact_ref[...] = xact                                    # output 1 (f32, s2d layout)

    a = xact.astype(jnp.bfloat16)                           # conv operand precision
    carry_ref[...] = a[:, Th - 1:Th, :, 2 * Cp:4 * Cp]      # halo for the next row tile

    # ---- stride-2 3x3 conv: 6 dots over the 9 valid s2d taps, f32 accumulate ----
    # channel block b = 2*p + q holds input pixel (2i+p, 2j+q); only 9 of the 16
    # (row-offset, col-offset, p, q) combinations hit real 3x3 kernel positions.
    b01 = a[:, :, :, 0:2 * Cp]                              # blocks 0,1  (p = 0)
    b23 = a[:, :, :, 2 * Cp:4 * Cp]                         # blocks 2,3  (p = 1)
    if Th > 1:
        h23 = jnp.concatenate([halo, b23[:, :Th - 1]], axis=1)   # blocks 2,3, rows -1..Th-2
    else:
        h23 = halo
    s1 = _shift_cols_right(a[:, :, :, Cp:2 * Cp])           # block 1, col-shifted  (kx = 0)
    s3 = _shift_cols_right(a[:, :, :, 3 * Cp:4 * Cp])       # block 3, col-shifted
    hs3 = _shift_cols_right(h23[:, :, :, Cp:2 * Cp])        # block 3, row+col shifted

    def flat(v):                                            # (Bb,Th,Wo,K) -> (M,K)
        return v.reshape(M, v.shape[3])

    f32 = jnp.float32
    acc = jnp.dot(flat(b01), w_ref[0:2 * Cp, :], preferred_element_type=f32)   # ky=1,kx=1,2
    acc += jnp.dot(flat(b23), w_ref[2 * Cp:4 * Cp, :], preferred_element_type=f32)  # ky=2
    acc += jnp.dot(flat(h23), w_ref[4 * Cp:6 * Cp, :], preferred_element_type=f32)  # ky=0
    acc += jnp.dot(flat(s1), w_ref[6 * Cp:7 * Cp, :], preferred_element_type=f32)   # ky=1,kx=0
    acc += jnp.dot(flat(s3), w_ref[7 * Cp:8 * Cp, :], preferred_element_type=f32)   # ky=2,kx=0
    acc += jnp.dot(flat(hs3), w_ref[8 * Cp:9 * Cp, :], preferred_element_type=f32)  # ky=0,kx=0

    y_ref[...] = (acc + cb_ref[...]).reshape(Bb, Th, Wo, Cop)


# ---------------------------------------------------------------------------
# Wrapper
# ---------------------------------------------------------------------------
def _largest_divisor_leq(n, cap):
    cap = max(1, min(n, cap))
    for cand in range(cap, 0, -1):
        if n % cand == 0:
            return cand
    return 1


def _pick_tiles(N, Ho, Wo, Cp, Cop, budget_bytes=_VMEM_WORKING_BUDGET):
    """Pick (batch block Bb, s2d-row tile Th) so the apply kernel's per-step working set
    (double-buffered x/xact/y blocks + bf16 tap temporaries + f32 accumulator) stays under
    budget_bytes, while keeping >= 2 grid steps on the parallel batch axis when N >= 2."""
    bx = Wo * 4 * Cp * 4             # one f32 s2d row of x (== one row of xact)
    by = Wo * Cop * 4                # one f32 row of y
    per_row = int(6.5 * bx + 3 * by)  # generous per-(batch, row) estimate
    max_rows = max(1, budget_bytes // per_row)
    bb_cap = max(1, N // 2) if N > 1 else 1            # >= 2 parallel steps (megacore)
    Bb = _largest_divisor_leq(N, min(bb_cap, max_rows))
    Th = _largest_divisor_leq(Ho, max(1, max_rows // Bb))
    return Bb, Th


def _conv_weights_s2d(w_oihw, Cin, Cout, Cp, Cop):
    """Pack the 3x3 stride-2 conv weights into the (9*Cp, Cop) bf16 layout consumed by the
    kernel's six dots.  Only the 9 valid space-to-depth taps are kept (the other 7 of the
    16 (di,dj,p,q) combinations never touch a real kernel position)."""
    w_hwio = jnp.transpose(w_oihw, (2, 3, 1, 0)).astype(jnp.float32)   # (3,3,Cin,Cout)

    def blk(ky, kx):
        return jnp.zeros((Cp, Cop), jnp.float32).at[:Cin, :Cout].set(w_hwio[ky, kx])

    w9 = jnp.concatenate([
        blk(1, 1), blk(1, 2),        # rows 0    :2*Cp -> operand a[..., 0:2Cp]
        blk(2, 1), blk(2, 2),        # rows 2*Cp :4*Cp -> operand a[..., 2Cp:4Cp]
        blk(0, 1), blk(0, 2),        # rows 4*Cp :6*Cp -> operand h23 (row-shifted 2:4)
        blk(1, 0),                   # rows 6*Cp :7*Cp -> operand s1  (col-shifted block 1)
        blk(2, 0),                   # rows 7*Cp :8*Cp -> operand s3  (col-shifted block 3)
        blk(0, 0),                   # rows 8*Cp :9*Cp -> operand hs3 (row+col-shifted 3)
    ], axis=0)
    return w9.astype(jnp.bfloat16)


def downsampling_module(x_nchw, params):
    """x_nchw: (N, Cin, H, W) f32; params = (gamma, beta, w_oihw, conv_bias).
    Returns (x_act, downsampled) matching DownsamplingModule.forward."""
    gamma, beta, w_oihw, cbias = params
    N, Cin, H, W = x_nchw.shape
    Cout = w_oihw.shape[0]
    assert H % 2 == 0 and W % 2 == 0, "stride-2 path assumes even H, W"
    Ho, Wo = H // 2, W // 2

    Cp = ((Cin + LANE - 1) // LANE) * LANE       # lane-dense channel padding
    Cop = ((Cout + LANE - 1) // LANE) * LANE
    Bb, Th = _pick_tiles(N, Ho, Wo, Cp, Cop)
    grid = (N // Bb, Ho // Th)

    # --- layout plumbing: NCHW -> NHWC, pad channels, 2x2 space-to-depth ---
    x = jnp.transpose(x_nchw, (0, 2, 3, 1)).astype(jnp.float32)          # (N,H,W,Cin)
    x = jnp.pad(x, ((0, 0), (0, 0), (0, 0), (0, Cp - Cin)))              # (N,H,W,Cp)
    # (n,i,p,j,q,c) -> (n,i,j,p,q,c): channel block index = 2*p + q
    xs = (x.reshape(N, Ho, 2, Wo, 2, Cp)
            .transpose(0, 1, 3, 2, 4, 5)
            .reshape(N, Ho, Wo, 4 * Cp))

    g_p = jnp.zeros((1, Cp), jnp.float32).at[0, :Cin].set(gamma.astype(jnp.float32))
    b_p = jnp.zeros((1, Cp), jnp.float32).at[0, :Cin].set(beta.astype(jnp.float32))
    cb_p = jnp.zeros((1, Cop), jnp.float32).at[0, :Cout].set(cbias.astype(jnp.float32))
    w9 = _conv_weights_s2d(w_oihw, Cin, Cout, Cp, Cop)

    cparams = pltpu.CompilerParams(
        dimension_semantics=("parallel", "arbitrary"),
        vmem_limit_bytes=_VMEM_LIMIT_BYTES)

    # --- pass 1: per-(instance, channel) folded InstanceNorm scale/shift ---
    scale_shift = pl.pallas_call(
        instnorm_stats_kernel,
        out_shape=jax.ShapeDtypeStruct((N, 2, Cp), jnp.float32),
        grid=grid,
        in_specs=[
            pl.BlockSpec((Bb, Th, Wo, 4 * Cp), lambda n, t: (n, t, 0, 0)),
            pl.BlockSpec((1, Cp), lambda n, t: (0, 0)),
            pl.BlockSpec((1, Cp), lambda n, t: (0, 0)),
        ],
        out_specs=pl.BlockSpec((Bb, 2, Cp), lambda n, t: (n, 0, 0)),
        scratch_shapes=[pltpu.VMEM((Bb, Cp), jnp.float32),
                        pltpu.VMEM((Bb, Cp), jnp.float32)],
        compiler_params=cparams,
    )(xs, g_p, b_p)

    # --- pass 2: normalize + LeakyReLU + stride-2 3x3 conv, tiled over s2d rows ---
    xact_s2d, y_s2d = pl.pallas_call(
        downsample_apply_kernel,
        out_shape=(jax.ShapeDtypeStruct((N, Ho, Wo, 4 * Cp), jnp.float32),
                   jax.ShapeDtypeStruct((N, Ho, Wo, Cop), jnp.float32)),
        grid=grid,
        in_specs=[
            pl.BlockSpec((Bb, Th, Wo, 4 * Cp), lambda n, t: (n, t, 0, 0)),
            pl.BlockSpec((Bb, 2, Cp), lambda n, t: (n, 0, 0)),
            pl.BlockSpec((9 * Cp, Cop), lambda n, t: (0, 0)),
            pl.BlockSpec((1, Cop), lambda n, t: (0, 0)),
        ],
        out_specs=(pl.BlockSpec((Bb, Th, Wo, 4 * Cp), lambda n, t: (n, t, 0, 0)),
                   pl.BlockSpec((Bb, Th, Wo, Cop), lambda n, t: (n, t, 0, 0))),
        scratch_shapes=[pltpu.VMEM((Bb, 1, Wo, 2 * Cp), jnp.bfloat16)],
        compiler_params=cparams,
    )(xs, scale_shift, w9, cb_p)

    # --- un-space-to-depth / un-pad outputs back to NCHW ---
    xa = (xact_s2d.reshape(N, Ho, Wo, 2, 2, Cp)
                   .transpose(0, 1, 3, 2, 4, 5)
                   .reshape(N, H, W, Cp))[..., :Cin]
    x_out = jnp.transpose(xa, (0, 3, 1, 2))                              # (N,Cin,H,W)
    y_out = jnp.transpose(y_s2d[..., :Cout], (0, 3, 1, 2))               # (N,Cout,Ho,Wo)
    return x_out, y_out


def reference(x, params):
    """Pure-JAX reference mirroring the PyTorch forward (train-mode instance stats)."""
    gamma, beta, w, cb = params
    mean = x.mean(axis=(2, 3), keepdims=True)
    var = ((x - mean) ** 2).mean(axis=(2, 3), keepdims=True)
    xn = (x - mean) / jnp.sqrt(var + EPS)
    xn = xn * gamma[None, :, None, None] + beta[None, :, None, None]
    xa = jnp.where(xn >= 0, xn, LEAK * xn)
    y = jax.lax.conv_general_dilated(
        xa, w, window_strides=(2, 2), padding=((1, 1), (1, 1)),
        dimension_numbers=('NCHW', 'OIHW', 'NCHW'),
        precision=jax.lax.Precision.HIGHEST)
    y = y + cb[None, :, None, None]
    return xa, y


if __name__ == "__main__":
    N, Cin, Cout, H, W = 2, 4, 8, 16, 16
    key = jax.random.PRNGKey(0)
    ks = jax.random.split(key, 5)

    x = jax.random.normal(ks[0], (N, Cin, H, W), jnp.float32)
    bound = 1.0 / np.sqrt(Cin * 3 * 3)
    gamma = 1.0 + 0.1 * jax.random.normal(ks[1], (Cin,), jnp.float32)
    beta = 0.1 * jax.random.normal(ks[2], (Cin,), jnp.float32)
    w = jax.random.uniform(ks[3], (Cout, Cin, 3, 3), jnp.float32, -bound, bound)
    cb = jax.random.uniform(ks[4], (Cout,), jnp.float32, -bound, bound)
    params = (gamma, beta, w, cb)

    fwd = jax.jit(downsampling_module)
    x_act, down = jax.block_until_ready(fwd(x, params))
    assert x_act.shape == (N, Cin, H, W)
    assert down.shape == (N, Cout, H // 2, W // 2)

    x_ref, d_ref = jax.block_until_ready(reference(x, params))
    # norm + lrelu path is pure f32 VPU work -> tight tolerance
    np.testing.assert_allclose(np.asarray(x_act), np.asarray(x_ref), atol=2e-4, rtol=2e-4)
    # conv operands run in bf16 on the MXU (f32 accumulate) vs. the f32 HIGHEST reference
    np.testing.assert_allclose(np.asarray(down), np.asarray(d_ref), atol=2e-2, rtol=2e-2)
    print("KERNEL_OK")
</pallas_src>

<mosaic_0001>
module attributes {stable_mosaic.version = 11 : i64} {
  func.func @instnorm_stats_kernel(%arg0: i32, %arg1: i32, %arg2: memref<1x8x8x512xf32, #tpu.memory_space<vmem>>, %arg3: memref<1x128xf32, #tpu.memory_space<vmem>>, %arg4: memref<1x128xf32, #tpu.memory_space<vmem>>, %arg5: memref<1x2x128xf32, #tpu.memory_space<vmem>>, %arg6: memref<1x128xf32, #tpu.memory_space<vmem>>, %arg7: memref<1x128xf32, #tpu.memory_space<vmem>>) attributes {dimension_semantics = [#tpu.dimension_semantics<parallel>, #tpu.dimension_semantics<arbitrary>], iteration_bounds = array<i64: 2, 1>, scalar_prefetch = 0 : i64, scratch_operands = 2 : i64, tpu.core_type = #tpu.core_type<tc>, window_params = [{transform_indices = @transform_0, window_bounds = array<i64: 1, 8, 8, 512>}, {pipeline_mode = #tpu.pipeline_mode<synchronous>, transform_indices = @transform_1, window_bounds = array<i64: 1, 128>}, {pipeline_mode = #tpu.pipeline_mode<synchronous>, transform_indices = @transform_2, window_bounds = array<i64: 1, 128>}, {transform_indices = @transform_3, window_bounds = array<i64: 1, 2, 128>}]} {
    %c0_i32 = arith.constant 0 : i32
    %0 = arith.cmpi eq, %arg1, %c0_i32 : i32
    %1 = arith.extui %0 : i1 to i32
    %c0_i32_0 = arith.constant 0 : i32
    %2 = arith.cmpi ne, %1, %c0_i32_0 : i32
    scf.if %2 {
      %cst_17 = arith.constant 0.000000e+00 : f32
      %32 = vector.broadcast %cst_17 : f32 to vector<1x128xf32>
      %c0_18 = arith.constant 0 : index
      %c0_19 = arith.constant 0 : index
      %33 = vector.load %arg6[%c0_18, %c0_19] : memref<1x128xf32, #tpu.memory_space<vmem>>, vector<1x128xf32>
      tpu.vector_store %arg6[%c0_18, %c0_19], %32 {strides = array<i32>} : memref<1x128xf32, #tpu.memory_space<vmem>>, vector<1x128xf32>,
      %cst_20 = arith.constant 0.000000e+00 : f32
      %34 = vector.broadcast %cst_20 : f32 to vector<1x128xf32>
      %c0_21 = arith.constant 0 : index
      %c0_22 = arith.constant 0 : index
      %35 = vector.load %arg7[%c0_21, %c0_22] : memref<1x128xf32, #tpu.memory_space<vmem>>, vector<1x128xf32>
      tpu.vector_store %arg7[%c0_21, %c0_22], %34 {strides = array<i32>} : memref<1x128xf32, #tpu.memory_space<vmem>>, vector<1x128xf32>,
    } else {
    }
    %c0 = arith.constant 0 : index
    %c0_1 = arith.constant 0 : index
    %c0_2 = arith.constant 0 : index
    %c0_3 = arith.constant 0 : index
    %3 = vector.load %arg2[%c0, %c0_1, %c0_2, %c0_3] : memref<1x8x8x512xf32, #tpu.memory_space<vmem>>, vector<1x8x8x512xf32>
    %cst = arith.constant dense<0.000000e+00> : vector<1x8x512xf32>
    %4 = vector.multi_reduction <add>, %3, %cst [1] : vector<1x8x8x512xf32> to vector<1x8x512xf32>
    %cst_4 = arith.constant dense<0.000000e+00> : vector<1x512xf32>
    %5 = vector.multi_reduction <add>, %4, %cst_4 [1] : vector<1x8x512xf32> to vector<1x512xf32>
    %6 = arith.mulf %3, %3 : vector<1x8x8x512xf32>
    %cst_5 = arith.constant dense<0.000000e+00> : vector<1x8x512xf32>
    %7 = vector.multi_reduction <add>, %6, %cst_5 [1] : vector<1x8x8x512xf32> to vector<1x8x512xf32>
    %cst_6 = arith.constant dense<0.000000e+00> : vector<1x512xf32>
    %8 = vector.multi_reduction <add>, %7, %cst_6 [1] : vector<1x8x512xf32> to vector<1x512xf32>
    %c0_7 = arith.constant 0 : index
    %c0_8 = arith.constant 0 : index
    %9 = vector.load %arg6[%c0_7, %c0_8] : memref<1x128xf32, #tpu.memory_space<vmem>>, vector<1x128xf32>
    %10 = vector.extract_strided_slice %5 {offsets = [0, 0], sizes = [1, 128], strides = [1, 1]} : vector<1x512xf32> to vector<1x128xf32>
    %11 = vector.extract_strided_slice %5 {offsets = [0, 128], sizes = [1, 128], strides = [1, 1]} : vector<1x512xf32> to vector<1x128xf32>
    %12 = arith.addf %10, %11 : vector<1x128xf32>
    %13 = vector.extract_strided_slice %5 {offsets = [0, 256], sizes = [1, 128], strides = [1, 1]} : vector<1x512xf32> to vector<1x128xf32>
    %14 = arith.addf %12, %13 : vector<1x128xf32>
    %15 = vector.extract_strided_slice %5 {offsets = [0, 384], sizes = [1, 128], strides = [1, 1]} : vector<1x512xf32> to vector<1x128xf32>
    %16 = arith.addf %14, %15 : vector<1x128xf32>
    %17 = arith.addf %9, %16 : vector<1x128xf32>
    %c0_9 = arith.constant 0 : index
    %c0_10 = arith.constant 0 : index
    %18 = vector.load %arg6[%c0_9, %c0_10] : memref<1x128xf32, #tpu.memory_space<vmem>>, vector<1x128xf32>
    tpu.vector_store %arg6[%c0_9, %c0_10], %17 {strides = array<i32>} : memref<1x128xf32, #tpu.memory_space<vmem>>, vector<1x128xf32>,
    %c0_11 = arith.constant 0 : index
    %c0_12 = arith.constant 0 : index
    %19 = vector.load %arg7[%c0_11, %c0_12] : memref<1x128xf32, #tpu.memory_space<vmem>>, vector<1x128xf32>
    %20 = vector.extract_strided_slice %8 {offsets = [0, 0], sizes = [1, 128], strides = [1, 1]} : vector<1x512xf32> to vector<1x128xf32>
    %21 = vector.extract_strided_slice %8 {offsets = [0, 128], sizes = [1, 128], strides = [1, 1]} : vector<1x512xf32> to vector<1x128xf32>
    %22 = arith.addf %20, %21 : vector<1x128xf32>
    %23 = vector.extract_strided_slice %8 {offsets = [0, 256], sizes = [1, 128], strides = [1, 1]} : vector<1x512xf32> to vector<1x128xf32>
    %24 = arith.addf %22, %23 : vector<1x128xf32>
    %25 = vector.extract_strided_slice %8 {offsets = [0, 384], sizes = [1, 128], strides = [1, 1]} : vector<1x512xf32> to vector<1x128xf32>
    %26 = arith.addf %24, %25 : vector<1x128xf32>
    %27 = arith.addf %19, %26 : vector<1x128xf32>
    %c0_13 = arith.constant 0 : index
    %c0_14 = arith.constant 0 : index
    %28 = vector.load %arg7[%c0_13, %c0_14] : memref<1x128xf32, #tpu.memory_space<vmem>>, vector<1x128xf32>
    tpu.vector_store %arg7[%c0_13, %c0_14], %27 {strides = array<i32>} : memref<1x128xf32, #tpu.memory_space<vmem>>, vector<1x128xf32>,
    %c0_i32_15 = arith.constant 0 : i32
    %29 = arith.cmpi eq, %arg1, %c0_i32_15 : i32
    %30 = arith.extui %29 : i1 to i32
    %c0_i32_16 = arith.constant 0 : i32
    %31 = arith.cmpi ne, %30, %c0_i32_16 : i32
    scf.if %31 {
      %c0_17 = arith.constant 0 : index
      %c0_18 = arith.constant 0 : index
      %32 = vector.load %arg6[%c0_17, %c0_18] : memref<1x128xf32, #tpu.memory_space<vmem>>, vector<1x128xf32>
      %cst_19 = arith.constant 3.906250e-03 : f32
      %33 = vector.broadcast %cst_19 : f32 to vector<1x128xf32>
      %34 = arith.mulf %32, %33 : vector<1x128xf32>
      %c0_20 = arith.constant 0 : index
      %c0_21 = arith.constant 0 : index
      %35 = vector.load %arg7[%c0_20, %c0_21] : memref<1x128xf32, #tpu.memory_space<vmem>>, vector<1x128xf32>
      %cst_22 = arith.constant 3.906250e-03 : f32
      %36 = vector.broadcast %cst_22 : f32 to vector<1x128xf32>
      %37 = arith.mulf %35, %36 : vector<1x128xf32>
      %38 = arith.mulf %34, %34 : vector<1x128xf32>
      %39 = arith.subf %37, %38 : vector<1x128xf32>
      %cst_23 = arith.constant 0.000000e+00 : f32
      %40 = vector.broadcast %cst_23 : f32 to vector<1x128xf32>
      %41 = arith.maximumf %39, %40 : vector<1x128xf32>
      %cst_24 = arith.constant 9.99999974E-6 : f32
      %42 = vector.broadcast %cst_24 : f32 to vector<1x128xf32>
      %43 = arith.addf %41, %42 : vector<1x128xf32>
      %44 = math.rsqrt %43 : vector<1x128xf32>
      %c0_25 = arith.constant 0 : index
      %c0_26 = arith.constant 0 : index
      %45 = vector.load %arg3[%c0_25, %c0_26] : memref<1x128xf32, #tpu.memory_space<vmem>>, vector<1x128xf32>
      %46 = arith.mulf %44, %45 : vector<1x128xf32>
      %c0_27 = arith.constant 0 : index
      %c0_28 = arith.constant 0 : index
      %47 = vector.load %arg4[%c0_27, %c0_28] : memref<1x128xf32, #tpu.memory_space<vmem>>, vector<1x128xf32>
      %48 = arith.mulf %34, %46 : vector<1x128xf32>
      %49 = arith.subf %47, %48 : vector<1x128xf32>
      %50 = vector.shape_cast %46 : vector<1x128xf32> to vector<1x1x128xf32>
      %51 = vector.shape_cast %49 : vector<1x128xf32> to vector<1x1x128xf32>
      %52 = tpu.concatenate %50, %51 in 1 : vector<1x1x128xf32>, vector<1x1x128xf32> -> vector<1x2x128xf32>
      %c0_29 = arith.constant 0 : index
      %c0_30 = arith.constant 0 : index
      %c0_31 = arith.constant 0 : index
      %53 = vector.load %arg5[%c0_29, %c0_30, %c0_31] : memref<1x2x128xf32, #tpu.memory_space<vmem>>, vector<1x2x128xf32>
      tpu.vector_store %arg5[%c0_29, %c0_30, %c0_31], %52 {strides = array<i32>} : memref<1x2x128xf32, #tpu.memory_space<vmem>>, vector<1x2x128xf32>,
    } else {
    }
    return
  }
  func.func @transform_0(%arg0: i32, %arg1: i32) -> (i32, i32, i32, i32) {
    %c0_i32 = arith.constant 0 : i32
    %c0_i32_0 = arith.constant 0 : i32
    %c0_i32_1 = arith.constant 0 : i32
    return %arg0, %arg1, %c0_i32, %c0_i32_0 : i32, i32, i32, i32
  }
  func.func @transform_1(%arg0: i32, %arg1: i32) -> (i32, i32) {
    %c0_i32 = arith.constant 0 : i32
    %c0_i32_0 = arith.constant 0 : i32
    %c0_i32_1 = arith.constant 0 : i32
    return %c0_i32, %c0_i32_0 : i32, i32
  }
  func.func @transform_2(%arg0: i32, %arg1: i32) -> (i32, i32) {
    %c0_i32 = arith.constant 0 : i32
    %c0_i32_0 = arith.constant 0 : i32
    %c0_i32_1 = arith.constant 0 : i32
    return %c0_i32, %c0_i32_0 : i32, i32
  }
  func.func @transform_3(%arg0: i32, %arg1: i32) -> (i32, i32, i32) {
    %c0_i32 = arith.constant 0 : i32
    %c0_i32_0 = arith.constant 0 : i32
    %c0_i32_1 = arith.constant 0 : i32
    return %arg0, %c0_i32, %c0_i32_0 : i32, i32, i32
  }
}

module attributes {stable_mosaic.version = 11 : i64} {
  func.func @downsample_apply_kernel(%arg0: i32, %arg1: i32, %arg2: memref<1x8x8x512xf32, #tpu.memory_space<vmem>>, %arg3: memref<1x2x128xf32, #tpu.memory_space<vmem>>, %arg4: memref<1152x128xbf16, #tpu.memory_space<vmem>>, %arg5: memref<1x128xf32, #tpu.memory_space<vmem>>, %arg6: memref<1x8x8x512xf32, #tpu.memory_space<vmem>>, %arg7: memref<1x8x8x128xf32, #tpu.memory_space<vmem>>, %arg8: memref<1x1x8x256xbf16, #tpu.memory_space<vmem>>) attributes {dimension_semantics = [#tpu.dimension_semantics<parallel>, #tpu.dimension_semantics<arbitrary>], iteration_bounds = array<i64: 2, 1>, scalar_prefetch = 0 : i64, scratch_operands = 1 : i64, tpu.core_type = #tpu.core_type<tc>, window_params = [{transform_indices = @transform_0, window_bounds = array<i64: 1, 8, 8, 512>}, {transform_indices = @transform_1, window_bounds = array<i64: 1, 2, 128>}, {pipeline_mode = #tpu.pipeline_mode<synchronous>, transform_indices = @transform_2, window_bounds = array<i64: 1152, 128>}, {pipeline_mode = #tpu.pipeline_mode<synchronous>, transform_indices = @transform_3, window_bounds = array<i64: 1, 128>}, {transform_indices = @transform_4, window_bounds = array<i64: 1, 8, 8, 512>}, {transform_indices = @transform_5, window_bounds = array<i64: 1, 8, 8, 128>}]} {
    %c0_i32 = arith.constant 0 : i32
    %0 = arith.cmpi eq, %arg1, %c0_i32 : i32
    %1 = arith.extui %0 : i1 to i32
    %c0_i32_0 = arith.constant 0 : i32
    %2 = arith.cmpi ne, %1, %c0_i32_0 : i32
    scf.if %2 {
      %cst_42 = arith.constant 0.000000e+00 : bf16
      %71 = vector.broadcast %cst_42 : bf16 to vector<1x1x8x256xbf16>
      %c0_43 = arith.constant 0 : index
      %c0_44 = arith.constant 0 : index
      %c0_45 = arith.constant 0 : index
      %c0_46 = arith.constant 0 : index
      %72 = vector.load %arg8[%c0_43, %c0_44, %c0_45, %c0_46] : memref<1x1x8x256xbf16, #tpu.memory_space<vmem>>, vector<1x1x8x256xbf16>
      tpu.vector_store %arg8[%c0_43, %c0_44, %c0_45, %c0_46], %71 {strides = array<i32>} : memref<1x1x8x256xbf16, #tpu.memory_space<vmem>>, vector<1x1x8x256xbf16>,
    } else {
    }
    %c0 = arith.constant 0 : index
    %c0_1 = arith.constant 0 : index
    %c0_2 = arith.constant 0 : index
    %c0_3 = arith.constant 0 : index
    %3 = vector.load %arg8[%c0, %c0_1, %c0_2, %c0_3] : memref<1x1x8x256xbf16, #tpu.memory_space<vmem>>, vector<1x1x8x256xbf16>
    %c0_4 = arith.constant 0 : index
    %c0_5 = arith.constant 0 : index
    %c0_6 = arith.constant 0 : index
    %4 = vector.load %arg3[%c0_4, %c0_5, %c0_6] : memref<1x2x128xf32, #tpu.memory_space<vmem>>, vector<1x2x128xf32>
    %5 = vector.extract_strided_slice %4 {offsets = [0, 0, 0], sizes = [1, 1, 128], strides = [1, 1, 1]} : vector<1x2x128xf32> to vector<1x1x128xf32>
    %6 = vector.shape_cast %5 : vector<1x1x128xf32> to vector<1x128xf32>
    %7 = tpu.concatenate %6, %6, %6, %6 in 1 : vector<1x128xf32>, vector<1x128xf32>, vector<1x128xf32>, vector<1x128xf32> -> vector<1x512xf32>
    %8 = vector.shape_cast %7 : vector<1x512xf32> to vector<1x1x1x512xf32>
    %9 = vector.extract_strided_slice %4 {offsets = [0, 1, 0], sizes = [1, 1, 128], strides = [1, 1, 1]} : vector<1x2x128xf32> to vector<1x1x128xf32>
    %10 = vector.shape_cast %9 : vector<1x1x128xf32> to vector<1x128xf32>
    %11 = tpu.concatenate %10, %10, %10, %10 in 1 : vector<1x128xf32>, vector<1x128xf32>, vector<1x128xf32>, vector<1x128xf32> -> vector<1x512xf32>
    %12 = vector.shape_cast %11 : vector<1x512xf32> to vector<1x1x1x512xf32>
    %c0_7 = arith.constant 0 : index
    %c0_8 = arith.constant 0 : index
    %c0_9 = arith.constant 0 : index
    %c0_10 = arith.constant 0 : index
    %13 = vector.load %arg2[%c0_7, %c0_8, %c0_9, %c0_10] : memref<1x8x8x512xf32, #tpu.memory_space<vmem>>, vector<1x8x8x512xf32>
    %14 = vector.broadcast %8 : vector<1x1x1x512xf32> to vector<1x8x8x512xf32>
    %15 = arith.mulf %13, %14 : vector<1x8x8x512xf32>
    %16 = vector.broadcast %12 : vector<1x1x1x512xf32> to vector<1x8x8x512xf32>
    %17 = arith.addf %15, %16 : vector<1x8x8x512xf32>
    %cst = arith.constant 0.000000e+00 : f32
    %18 = vector.broadcast %cst : f32 to vector<1x8x8x512xf32>
    %19 = arith.cmpf oge, %17, %18 : vector<1x8x8x512xf32>
    %cst_11 = arith.constant 0.00999999977 : f32
    %20 = vector.broadcast %cst_11 : f32 to vector<1x8x8x512xf32>
    %21 = arith.mulf %20, %17 : vector<1x8x8x512xf32>
    %22 = arith.select %19, %17, %21 : vector<1x8x8x512xi1>, vector<1x8x8x512xf32>
    %c0_12 = arith.constant 0 : index
    %c0_13 = arith.constant 0 : index
    %c0_14 = arith.constant 0 : index
    %c0_15 = arith.constant 0 : index
    %23 = vector.load %arg6[%c0_12, %c0_13, %c0_14, %c0_15] : memref<1x8x8x512xf32, #tpu.memory_space<vmem>>, vector<1x8x8x512xf32>
    tpu.vector_store %arg6[%c0_12, %c0_13, %c0_14, %c0_15], %22 {strides = array<i32>} : memref<1x8x8x512xf32, #tpu.memory_space<vmem>>, vector<1x8x8x512xf32>,
    %24 = arith.truncf %22 : vector<1x8x8x512xf32> to vector<1x8x8x512xbf16>
    %25 = vector.extract_strided_slice %24 {offsets = [0, 7, 0, 256], sizes = [1, 1, 8, 256], strides = [1, 1, 1, 1]} : vector<1x8x8x512xbf16> to vector<1x1x8x256xbf16>
    %c0_16 = arith.constant 0 : index
    %c0_17 = arith.constant 0 : index
    %c0_18 = arith.constant 0 : index
    %c0_19 = arith.constant 0 : index
    %26 = vector.load %arg8[%c0_16, %c0_17, %c0_18, %c0_19] : memref<1x1x8x256xbf16, #tpu.memory_space<vmem>>, vector<1x1x8x256xbf16>
    tpu.vector_store %arg8[%c0_16, %c0_17, %c0_18, %c0_19], %25 {strides = array<i32>} : memref<1x1x8x256xbf16, #tpu.memory_space<vmem>>, vector<1x1x8x256xbf16>,
    %27 = vector.extract_strided_slice %24 {offsets = [0, 0, 0, 0], sizes = [1, 8, 8, 256], strides = [1, 1, 1, 1]} : vector<1x8x8x512xbf16> to vector<1x8x8x256xbf16>
    %28 = vector.extract_strided_slice %24 {offsets = [0, 0, 0, 256], sizes = [1, 8, 8, 256], strides = [1, 1, 1, 1]} : vector<1x8x8x512xbf16> to vector<1x8x8x256xbf16>
    %29 = vector.extract_strided_slice %28 {offsets = [0, 0, 0, 0], sizes = [1, 7, 8, 256], strides = [1, 1, 1, 1]} : vector<1x8x8x256xbf16> to vector<1x7x8x256xbf16>
    %30 = tpu.concatenate %3, %29 in 1 : vector<1x1x8x256xbf16>, vector<1x7x8x256xbf16> -> vector<1x8x8x256xbf16>
    %31 = vector.extract_strided_slice %24 {offsets = [0, 0, 0, 128], sizes = [1, 8, 8, 128], strides = [1, 1, 1, 1]} : vector<1x8x8x512xbf16> to vector<1x8x8x128xbf16>
    %cst_20 = arith.constant 0.000000e+00 : bf16
    %32 = vector.broadcast %cst_20 : bf16 to vector<1x8x1x128xbf16>
    %33 = vector.extract_strided_slice %31 {offsets = [0, 0, 0, 0], sizes = [1, 8, 7, 128], strides = [1, 1, 1, 1]} : vector<1x8x8x128xbf16> to vector<1x8x7x128xbf16>
    %34 = tpu.concatenate %32, %33 in 2 : vector<1x8x1x128xbf16>, vector<1x8x7x128xbf16> -> vector<1x8x8x128xbf16>
    %35 = vector.extract_strided_slice %24 {offsets = [0, 0, 0, 384], sizes = [1, 8, 8, 128], strides = [1, 1, 1, 1]} : vector<1x8x8x512xbf16> to vector<1x8x8x128xbf16>
    %cst_21 = arith.constant 0.000000e+00 : bf16
    %36 = vector.broadcast %cst_21 : bf16 to vector<1x8x1x128xbf16>
    %37 = vector.extract_strided_slice %35 {offsets = [0, 0, 0, 0], sizes = [1, 8, 7, 128], strides = [1, 1, 1, 1]} : vector<1x8x8x128xbf16> to vector<1x8x7x128xbf16>
    %38 = tpu.concatenate %36, %37 in 2 : vector<1x8x1x128xbf16>, vector<1x8x7x128xbf16> -> vector<1x8x8x128xbf16>
    %39 = vector.extract_strided_slice %30 {offsets = [0, 0, 0, 128], sizes = [1, 8, 8, 128], strides = [1, 1, 1, 1]} : vector<1x8x8x256xbf16> to vector<1x8x8x128xbf16>
    %cst_22 = arith.constant 0.000000e+00 : bf16
    %40 = vector.broadcast %cst_22 : bf16 to vector<1x8x1x128xbf16>
    %41 = vector.extract_strided_slice %39 {offsets = [0, 0, 0, 0], sizes = [1, 8, 7, 128], strides = [1, 1, 1, 1]} : vector<1x8x8x128xbf16> to vector<1x8x7x128xbf16>
    %42 = tpu.concatenate %40, %41 in 2 : vector<1x8x1x128xbf16>, vector<1x8x7x128xbf16> -> vector<1x8x8x128xbf16>
    %43 = vector.shape_cast %27 : vector<1x8x8x256xbf16> to vector<64x256xbf16>
    %c0_23 = arith.constant 0 : index
    %c0_24 = arith.constant 0 : index
    %44 = vector.load %arg4[%c0_23, %c0_24] : memref<1152x128xbf16, #tpu.memory_space<vmem>>, vector<256x128xbf16>
    %cst_25 = arith.constant dense<0.000000e+00> : vector<64x128xf32>
    %45 = tpu.matmul %43, %44, %cst_25 {dimension_numbers = #tpu.dot_dimension_numbers<[1], [0], [0], [1], [0, 0, 1, 1], [], []>} : vector<64x256xbf16>, vector<256x128xbf16>, vector<64x128xf32> -> vector<64x128xf32>
    %46 = vector.shape_cast %28 : vector<1x8x8x256xbf16> to vector<64x256xbf16>
    %c256 = arith.constant 256 : index
    %c0_26 = arith.constant 0 : index
    %47 = vector.load %arg4[%c256, %c0_26] : memref<1152x128xbf16, #tpu.memory_space<vmem>>, vector<256x128xbf16>
    %cst_27 = arith.constant dense<0.000000e+00> : vector<64x128xf32>
    %48 = tpu.matmul %46, %47, %cst_27 {dimension_numbers = #tpu.dot_dimension_numbers<[1], [0], [0], [1], [0, 0, 1, 1], [], []>} : vector<64x256xbf16>, vector<256x128xbf16>, vector<64x128xf32> -> vector<64x128xf32>
    %49 = arith.addf %45, %48 : vector<64x128xf32>
    %50 = vector.shape_cast %30 : vector<1x8x8x256xbf16> to vector<64x256xbf16>
    %c512 = arith.constant 512 : index
    %c0_28 = arith.constant 0 : index
    %51 = vector.load %arg4[%c512, %c0_28] : memref<1152x128xbf16, #tpu.memory_space<vmem>>, vector<256x128xbf16>
    %cst_29 = arith.constant dense<0.000000e+00> : vector<64x128xf32>
    %52 = tpu.matmul %50, %51, %cst_29 {dimension_numbers = #tpu.dot_dimension_numbers<[1], [0], [0], [1], [0, 0, 1, 1], [], []>} : vector<64x256xbf16>, vector<256x128xbf16>, vector<64x128xf32> -> vector<64x128xf32>
    %53 = arith.addf %49, %52 : vector<64x128xf32>
    %54 = vector.shape_cast %34 : vector<1x8x8x128xbf16> to vector<64x128xbf16>
    %c768 = arith.constant 768 : index
    %c0_30 = arith.constant 0 : index
    %55 = vector.load %arg4[%c768, %c0_30] : memref<1152x128xbf16, #tpu.memory_space<vmem>>, vector<128x128xbf16>
    %cst_31 = arith.constant dense<0.000000e+00> : vector<64x128xf32>
    %56 = tpu.matmul %54, %55, %cst_31 {dimension_numbers = #tpu.dot_dimension_numbers<[1], [0], [0], [1], [0, 0, 1, 1], [], []>} : vector<64x128xbf16>, vector<128x128xbf16>, vector<64x128xf32> -> vector<64x128xf32>
    %57 = arith.addf %53, %56 : vector<64x128xf32>
    %58 = vector.shape_cast %38 : vector<1x8x8x128xbf16> to vector<64x128xbf16>
    %c896 = arith.constant 896 : index
    %c0_32 = arith.constant 0 : index
    %59 = vector.load %arg4[%c896, %c0_32] : memref<1152x128xbf16, #tpu.memory_space<vmem>>, vector<128x128xbf16>
    %cst_33 = arith.constant dense<0.000000e+00> : vector<64x128xf32>
    %60 = tpu.matmul %58, %59, %cst_33 {dimension_numbers = #tpu.dot_dimension_numbers<[1], [0], [0], [1], [0, 0, 1, 1], [], []>} : vector<64x128xbf16>, vector<128x128xbf16>, vector<64x128xf32> -> vector<64x128xf32>
    %61 = arith.addf %57, %60 : vector<64x128xf32>
    %62 = vector.shape_cast %42 : vector<1x8x8x128xbf16> to vector<64x128xbf16>
    %c1024 = arith.constant 1024 : index
    %c0_34 = arith.constant 0 : index
    %63 = vector.load %arg4[%c1024, %c0_34] : memref<1152x128xbf16, #tpu.memory_space<vmem>>, vector<128x128xbf16>
    %cst_35 = arith.constant dense<0.000000e+00> : vector<64x128xf32>
    %64 = tpu.matmul %62, %63, %cst_35 {dimension_numbers = #tpu.dot_dimension_numbers<[1], [0], [0], [1], [0, 0, 1, 1], [], []>} : vector<64x128xbf16>, vector<128x128xbf16>, vector<64x128xf32> -> vector<64x128xf32>
    %65 = arith.addf %61, %64 : vector<64x128xf32>
    %c0_36 = arith.constant 0 : index
    %c0_37 = arith.constant 0 : index
    %66 = vector.load %arg5[%c0_36, %c0_37] : memref<1x128xf32, #tpu.memory_space<vmem>>, vector<1x128xf32>
    %67 = vector.broadcast %66 : vector<1x128xf32> to vector<64x128xf32>
    %68 = arith.addf %65, %67 : vector<64x128xf32>
    %69 = vector.shape_cast %68 : vector<64x128xf32> to vector<1x8x8x128xf32>
    %c0_38 = arith.constant 0 : index
    %c0_39 = arith.constant 0 : index
    %c0_40 = arith.constant 0 : index
    %c0_41 = arith.constant 0 : index
    %70 = vector.load %arg7[%c0_38, %c0_39, %c0_40, %c0_41] : memref<1x8x8x128xf32, #tpu.memory_space<vmem>>, vector<1x8x8x128xf32>
    tpu.vector_store %arg7[%c0_38, %c0_39, %c0_40, %c0_41], %69 {strides = array<i32>} : memref<1x8x8x128xf32, #tpu.memory_space<vmem>>, vector<1x8x8x128xf32>,
    return
  }
  func.func @transform_0(%arg0: i32, %arg1: i32) -> (i32, i32, i32, i32) {
    %c0_i32 = arith.constant 0 : i32
    %c0_i32_0 = arith.constant 0 : i32
    %c0_i32_1 = arith.constant 0 : i32
    return %arg0, %arg1, %c0_i32, %c0_i32_0 : i32, i32, i32, i32
  }
  func.func @transform_1(%arg0: i32, %arg1: i32) -> (i32, i32, i32) {
    %c0_i32 = arith.constant 0 : i32
    %c0_i32_0 = arith.constant 0 : i32
    %c0_i32_1 = arith.constant 0 : i32
    return %arg0, %c0_i32, %c0_i32_0 : i32, i32, i32
  }
  func.func @transform_2(%arg0: i32, %arg1: i32) -> (i32, i32) {
    %c0_i32 = arith.constant 0 : i32
    %c0_i32_0 = arith.constant 0 : i32
    %c0_i32_1 = arith.constant 0 : i32
    return %c0_i32, %c0_i32_0 : i32, i32
  }
  func.func @transform_3(%arg0: i32, %arg1: i32) -> (i32, i32) {
    %c0_i32 = arith.constant 0 : i32
    %c0_i32_0 = arith.constant 0 : i32
    %c0_i32_1 = arith.constant 0 : i32
    return %c0_i32, %c0_i32_0 : i32, i32
  }
  func.func @transform_4(%arg0: i32, %arg1: i32) -> (i32, i32, i32, i32) {
    %c0_i32 = arith.constant 0 : i32
    %c0_i32_0 = arith.constant 0 : i32
    %c0_i32_1 = arith.constant 0 : i32
    return %arg0, %arg1, %c0_i32, %c0_i32_0 : i32, i32, i32, i32
  }
  func.func @transform_5(%arg0: i32, %arg1: i32) -> (i32, i32, i32, i32) {
    %c0_i32 = arith.constant 0 : i32
    %c0_i32_0 = arith.constant 0 : i32
    %c0_i32_1 = arith.constant 0 : i32
    return %arg0, %arg1, %c0_i32, %c0_i32_0 : i32, i32, i32, i32
  }
}

</mosaic_0001>

<bundles_post_ra>
// kernel: downsampling_module.2
= control target key start
LH: loop header
LB: loop body
LE: loop exit
PB: predicated region body
PF: predicated region fallthrough
CT: control target
= control target key end

     0   :  { %s565_s12 = smov 0   ;;  %s567_s13 = smov 0   ;;  %s693_s0 = inlined_call_operand.vmem [shape: f32[2,8,8,512], index: 0, kind: input, shape index: {}]   ;;  %s694_s1 = inlined_call_operand.vmem [shape: f32[1,128], index: 1, kind: input, shape index: {}]   ;;  %s695_s2 = inlined_call_operand.vmem [shape: f32[1,128], index: 2, kind: input, shape index: {}]   ;;  %s696_s3 = inlined_call_operand.vmem [shape: f32[2,2,128], index: 3, kind: output, shape index: {}]  }
   0x1   :  { %s569_s14 = smov 0  }
   0x2 LB: > { %s25_s15 = sadd.s32 1, %s538_s13  ;;  %p486_p0 = scmp.ge.s32.totalorder %s542_s14, 1  ;;  %s542_s14 = sphi %s569_s14, %s13_s14   ;;  %s538_s13 = sphi %s567_s13, %s698_s13   ;;  %s534_s12 = sphi %s565_s12, %s697_s12  }
   0x3   : > { %p27_p1 = scmp.ge.s32.totalorder %s25_s15, 2  ;;  %p157_p2 = scmp.lt.s32.totalorder %s542_s14, 3 }
   0x5   : > { %s700_s15 = smov (%p27_p1, %s25_s15), 0  ;;  %p158_p3 = pnand %p486_p0, %p157_p2 }
   0x6   : > { %p186_p4 = scmp.lt.s32.totalorder (!%p158_p3), %s534_s12, 1 }
   0x7   : > { %161 = sbr.rel (%p158_p3) target bundleno = 106 (0x6a), region = 32 }
   0xc   : > { %v544_v0 = vmov 0.0   ;;  %s702_s12 = smov (!%p186_p4, %s534_s12), 1  ;;  %vm409_vm0 = vcmask 1040384  }
   0xd   : > { %204 = vst [vmem:[#allocation2] sm:$0x1] %v544_v0  ;;  %205 = vst [vmem:[#allocation3] sm:$0x1] %v544_v0  ;;  %s492_s16 = sshll.u32 %s702_s12, 8  ;;  %s489_s24 = sshll.u32 %s702_s12, 1 }
   0xe   : > { %s589_s19 = scalar_lea.vmem %s693_s0, %s492_s16  ;;  %s199_s27 = scalar_lea.vmem %s696_s3, %s489_s24 }
   0xf   : > { %v206_v1 = vld [vmem:[%s589_s19] sm:$0xff]  ;;  %v207_v2 = vld [vmem:[%s589_s19 + $0x8] sm:$0xff]  ;;  %v208_v3 = vld [vmem:[%s589_s19 + $0x10] sm:$0xff] }
  0x10   : > { %v209_v4 = vld [vmem:[%s589_s19 + $0x18] sm:$0xff]  ;;  %v210_v5 = vld [vmem:[%s589_s19 + $0x20] sm:$0xff]  ;;  %v211_v6 = vld [vmem:[%s589_s19 + $0x28] sm:$0xff]  ;;  %v597_v7 = vmul.f32 %v206_v1, %v206_v1  ;;  %v599_v8 = vmul.f32 %v207_v2, %v207_v2  ;;  %v601_v9 = vmul.f32 %v208_v3, %v208_v3 }
  0x11   : > { %v212_v10 = vld [vmem:[%s589_s19 + $0x30] sm:$0xff]  ;;  %v213_v11 = vld [vmem:[%s589_s19 + $0x38] sm:$0xff]  ;;  %v214_v12 = vld [vmem:[%s589_s19 + $0x40] sm:$0xff]  ;;  %v238_v13 = vadd.f32 %v210_v5, %v206_v1  ;;  %v245_v14 = vadd.f32 %v211_v6, %v207_v2  ;;  %v606_v15 = vmul.f32 %v209_v4, %v209_v4  ;;  %v608_v16 = vmul.f32 %v210_v5, %v210_v5 }
  0x12   : > { %v215_v17 = vld [vmem:[%s589_s19 + $0x48] sm:$0xff]  ;;  %v216_v18 = vld [vmem:[%s589_s19 + $0x50] sm:$0xff]  ;;  %v217_v19 = vld [vmem:[%s589_s19 + $0x58] sm:$0xff]  ;;  %v252_v20 = vadd.f32 %v212_v10, %v208_v3  ;;  %v259_v21 = vadd.f32 %v213_v11, %v209_v4  ;;  %v613_v22 = vmul.f32 %v211_v6, %v211_v6  ;;  %v615_v23 = vmul.f32 %v212_v10, %v212_v10 }
  0x13   : > { %v218_v24 = vld [vmem:[%s589_s19 + $0x60] sm:$0xff]  ;;  %v219_v25 = vld [vmem:[%s589_s19 + $0x68] sm:$0xff]  ;;  %v220_v26 = vld [vmem:[%s589_s19 + $0x70] sm:$0xff]  ;;  %v239_v27 = vadd.f32 %v238_v13, %v214_v12  ;;  %v246_v28 = vadd.f32 %v245_v14, %v215_v17  ;;  %v620_v29 = vmul.f32 %v213_v11, %v213_v11  ;;  %v622_v30 = vmul.f32 %v214_v12, %v214_v12 }
  0x14   : > { %v221_v31 = vld [vmem:[%s589_s19 + $0x78] sm:$0xff]  ;;  %v222_v32 = vld [vmem:[%s589_s19 + $0x80] sm:$0xff]  ;;  %v223_v33 = vld [vmem:[%s589_s19 + $0x88] sm:$0xff]  ;;  %v253_v34 = vadd.f32 %v252_v20, %v216_v18  ;;  %v260_v35 = vadd.f32 %v259_v21, %v217_v19  ;;  %v627_v36 = vmul.f32 %v215_v17, %v215_v17  ;;  %v629_v37 = vmul.f32 %v216_v18, %v216_v18 }
  0x15   : > { %v224_v38 = vld [vmem:[%s589_s19 + $0x90] sm:$0xff]  ;;  %v225_v39 = vld [vmem:[%s589_s19 + $0x98] sm:$0xff]  ;;  %v240_v40 = vadd.f32 %v239_v27, %v218_v24  ;;  %v247_v41 = vadd.f32 %v246_v28, %v219_v25  ;;  %v633_v42 = vmul.f32 %v217_v19, %v217_v19  ;;  %v635_v43 = vmul.f32 %v218_v24, %v218_v24  ;;  %v226_v44 = vld [vmem:[%s589_s19 + $0xa0] sm:$0xff] }
  0x16   : > { %v227_v45 = vld [vmem:[%s589_s19 + $0xa8] sm:$0xff]  ;;  %v254_v46 = vadd.f32 %v253_v34, %v220_v26  ;;  %v261_v47 = vadd.f32 %v260_v35, %v221_v31  ;;  %v639_v48 = vmul.f32 %v219_v25, %v219_v25  ;;  %v641_v49 = vmul.f32 %v220_v26, %v220_v26  ;;  %v228_v50 = vld [vmem:[%s589_s19 + $0xb0] sm:$0xff]  ;;  %v229_v51 = vld [vmem:[%s589_s19 + $0xb8] sm:$0xff] }
  0x17   : > { %v241_v52 = vadd.f32 %v240_v40, %v222_v32  ;;  %v248_v53 = vadd.f32 %v247_v41, %v223_v33  ;;  %v645_v54 = vmul.f32 %v221_v31, %v221_v31  ;;  %v647_v55 = vmul.f32 %v222_v32, %v222_v32  ;;  %v230_v56 = vld [vmem:[%s589_s19 + $0xc0] sm:$0xff]  ;;  %v231_v57 = vld [vmem:[%s589_s19 + $0xc8] sm:$0xff]  ;;  %v232_v62 = vld [vmem:[%s589_s19 + $0xd0] sm:$0xff] }
  0x18   : > { %v255_v58 = vadd.f32 %v254_v46, %v224_v38  ;;  %v262_v59 = vadd.f32 %v261_v47, %v225_v39  ;;  %v307_v60 = vmul.f32 %v223_v33, %v223_v33  ;;  %v308_v61 = vmul.f32 %v224_v38, %v224_v38  ;;  %v233_v63 = vld [vmem:[%s589_s19 + $0xd8] sm:$0xff]  ;;  %v234_v4 = vld [vmem:[%s589_s19 + $0xe0] sm:$0xff]  ;;  %v235_v5 = vld [vmem:[%s589_s19 + $0xe8] sm:$0xff] }
  0x19   : > { %v242_v0 = vadd.f32 %v241_v52, %v226_v44  ;;  %v249_v1 = vadd.f32 %v248_v53, %v227_v45  ;;  %v309_v2 = vmul.f32 %v225_v39, %v225_v39  ;;  %v310_v3 = vmul.f32 %v226_v44, %v226_v44  ;;  %v236_v13 = vld [vmem:[%s589_s19 + $0xf0] sm:$0xff]  ;;  %v237_v14 = vld [vmem:[%s589_s19 + $0xf8] sm:$0xff] }
  0x1a   : > { %v256_v6 = vadd.f32 %v255_v58, %v228_v50  ;;  %v263_v10 = vadd.f32 %v262_v59, %v229_v51  ;;  %v311_v11 = vmul.f32 %v227_v45, %v227_v45  ;;  %v312_v12 = vmul.f32 %v228_v50, %v228_v50 }
  0x1b   : > { %v243_v17 = vadd.f32 %v242_v0, %v230_v56  ;;  %v250_v18 = vadd.f32 %v249_v1, %v231_v57  ;;  %v313_v19 = vmul.f32 %v229_v51, %v229_v51  ;;  %v314_v20 = vmul.f32 %v230_v56, %v230_v56 }
  0x1c   : > { %v257_v21 = vadd.f32 %v256_v6, %v232_v62  ;;  %v264_v24 = vadd.f32 %v263_v10, %v233_v63  ;;  %v315_v25 = vmul.f32 %v231_v57, %v231_v57  ;;  %v316_v26 = vmul.f32 %v232_v62, %v232_v62 }
  0x1d   : > { %v244_v27 = vadd.f32 %v243_v17, %v234_v4  ;;  %v251_v28 = vadd.f32 %v250_v18, %v235_v5  ;;  %v317_v31 = vmul.f32 %v233_v63, %v233_v63  ;;  %v318_v32 = vmul.f32 %v234_v4, %v234_v4 }
  0x1e   : > { %v258_v33 = vadd.f32 %v257_v21, %v236_v13  ;;  %v265_v34 = vadd.f32 %v264_v24, %v237_v14  ;;  %v319_v35 = vmul.f32 %v235_v5, %v235_v5  ;;  %v320_v38 = vmul.f32 %v236_v13, %v236_v13 }
  0x1f   : > { %v266_v39 = vrot.slane %v244_v27, 4  ;;  %v272_v40 = vrot.slane %v251_v28, 4  ;;  %v321_v41 = vmul.f32 %v237_v14, %v237_v14  ;;  %v322_v44 = vadd.f32 %v608_v16, %v597_v7 }
  0x20   : > { %v278_v45 = vrot.slane %v258_v33, 4  ;;  %v284_v46 = vrot.slane %v265_v34, 4  ;;  %v329_v47 = vadd.f32 %v613_v22, %v599_v8  ;;  %v336_v50 = vadd.f32 %v615_v23, %v601_v9 }
  0x21   : > { %v267_v51 = vadd.f32 %v266_v39, %v244_v27  ;;  %v273_v52 = vadd.f32 %v272_v40, %v251_v28  ;;  %v323_v53 = vadd.f32 %v322_v44, %v622_v30  ;;  %v343_v56 = vadd.f32 %v620_v29, %v606_v15  ;;  %v374_v44 = vld [vmem:[#allocation2] sm:$0x1] }
  0x22   : > { %v279_v57 = vadd.f32 %v278_v45, %v258_v33  ;;  %v285_v58 = vadd.f32 %v284_v46, %v265_v34  ;;  %v330_v59 = vadd.f32 %v329_v47, %v627_v36  ;;  %v337_v7 = vadd.f32 %v336_v50, %v629_v37 }
  0x23   : > { %v268_v16 = vrot.slane %v267_v51, 2  ;;  %v274_v62 = vrot.slane %v273_v52, 2  ;;  %v324_v8 = vadd.f32 %v323_v53, %v635_v43  ;;  %v344_v22 = vadd.f32 %v343_v56, %v633_v42 }
  0x24   : > { %v280_v9 = vrot.slane %v279_v57, 2  ;;  %v286_v23 = vrot.slane %v285_v58, 2  ;;  %v331_v63 = vadd.f32 %v330_v59, %v639_v48  ;;  %v338_v30 = vadd.f32 %v337_v7, %v641_v49 }
  0x25   : > { %v269_v0 = vadd.f32 %v268_v16, %v267_v51  ;;  %v275_v15 = vadd.f32 %v274_v62, %v273_v52  ;;  %v325_v29 = vadd.f32 %v324_v8, %v647_v55  ;;  %v345_v36 = vadd.f32 %v344_v22, %v645_v54 }
  0x26   : > { %v281_v1 = vadd.f32 %v280_v9, %v279_v57  ;;  %v287_v37 = vadd.f32 %v286_v23, %v285_v58  ;;  %v332_v4 = vadd.f32 %v331_v63, %v307_v60  ;;  %v339_v5 = vadd.f32 %v338_v30, %v308_v61  ;;  %v380_v9 = vld [vmem:[#allocation3] sm:$0x1] }
  0x27   : > { %v270_v6 = vrot.slane %v269_v0, 1  ;;  %v276_v43 = vrot.slane %v275_v15, 1  ;;  %v326_v10 = vadd.f32 %v325_v29, %v310_v3  ;;  %v346_v42 = vadd.f32 %v345_v36, %v309_v2 }
  0x28   : > { %v282_v13 = vrot.slane %v281_v1, 1  ;;  %v288_v14 = vrot.slane %v287_v37, 1  ;;  %v333_v17 = vadd.f32 %v332_v4, %v311_v11  ;;  %v340_v48 = vadd.f32 %v339_v5, %v312_v12 }
  0x29   : > { %v271_v18 = vadd.f32 %v270_v6, %v269_v0  ;;  %v277_v49 = vadd.f32 %v276_v43, %v275_v15  ;;  %v327_v21 = vadd.f32 %v326_v10, %v314_v20  ;;  %v347_v24 = vadd.f32 %v346_v42, %v313_v19  ;;  %v398_v6 = vld [vmem:[%s694_s1] sm:$0x1] }
  0x2a   : > { %v283_v27 = vadd.f32 %v282_v13, %v281_v1  ;;  %v334_v55 = vadd.f32 %v333_v17, %v315_v25  ;;  %v341_v28 = vadd.f32 %v340_v48, %v316_v26  ;;  %v289_v54 = vadd.f32 %v288_v14, %v287_v37  ;;  %v400_v13 = vld [vmem:[%s695_s2] sm:$0x1] }
  0x2b   : > { %v375_v33 = vadd.f32 %v277_v49, %v271_v18  ;;  %v328_v34 = vadd.f32 %v327_v21, %v318_v32  ;;  %v348_v60 = vadd.f32 %v347_v24, %v317_v31  ;;  %v404_v5 = vlaneseq }
  0x2c   : > { %v335_v61 = vadd.f32 %v334_v55, %v319_v35  ;;  %v342_v39 = vadd.f32 %v341_v28, %v320_v38 }
  0x2d   : > { %v376_v40 = vadd.f32 %v375_v33, %v283_v27  ;;  %v349_v3 = vadd.f32 %v348_v60, %v321_v41  ;;  %v350_v2 = vrot.slane %v328_v34, 4  ;;  %v405_v43 = vshrl.u32 %v404_v5, 7 }
  0x2e   : > { %v356_v45 = vrot.slane %v335_v61, 4  ;;  %v362_v11 = vrot.slane %v342_v39, 4 }
  0x2f   : > { %v377_v12 = vadd.f32 %v376_v40, %v289_v54  ;;  %v351_v46 = vadd.f32 %v350_v2, %v328_v34  ;;  %v368_v47 = vrot.slane %v349_v3, 4  ;;  %v406_v17 = vsub.s32 0, %v405_v43 }
  0x30   : > { %v357_v20 = vadd.f32 %v356_v45, %v335_v61  ;;  %v363_v19 = vadd.f32 %v362_v11, %v342_v39 }
  0x31   : > { %v378_v50 = vadd.f32 %v377_v12, %v374_v44  ;;  %v352_v25 = vrot.slane %v351_v46, 2  ;;  %v369_v26 = vadd.f32 %v368_v47, %v349_v3 }
  0x32   : > { %v358_v51 = vrot.slane %v357_v20, 2  ;;  %v364_v52 = vrot.slane %v363_v19, 2 }
  0x33   : > { %379 = vst [vmem:[#allocation2] sm:$0x1] %v378_v50  ;;  %v353_v31 = vadd.f32 %v352_v25, %v351_v46  ;;  %v370_v32 = vrot.slane %v369_v26, 2 }
  0x34   : > { %v359_v35 = vadd.f32 %v358_v51, %v357_v20  ;;  %v365_v38 = vadd.f32 %v364_v52, %v363_v19 }
  0x35   : > { %v354_v41 = vrot.slane %v353_v31, 1  ;;  %v371_v53 = vadd.f32 %v370_v32, %v369_v26 }
  0x36   : > { %v360_v56 = vrot.slane %v359_v35, 1  ;;  %v366_v57 = vrot.slane %v365_v38, 1 }
  0x37   : > { %v355_v58 = vadd.f32 %v354_v41, %v353_v31  ;;  %v372_v59 = vrot.slane %v371_v53, 1 }
  0x38   : > { %v361_v7 = vadd.f32 %v360_v56, %v359_v35  ;;  %v367_v16 = vadd.f32 %v366_v57, %v365_v38 }
  0x39   : > { %v373_v62 = vadd.f32 %v372_v59, %v371_v53 }
  0x3a   : > { %v381_v8 = vadd.f32 %v361_v7, %v355_v58  ;;  %v389_v30 = vld [vmem:[#allocation2] sm:$0x1] }
  0x3b   : > { %v390_v0 = vmul.f32 0.00390625, %v389_v30 }
  0x3c   : > { %v382_v22 = vadd.f32 %v381_v8, %v367_v16 }
  0x3d   : > { %v393_v15 = vmul.f32 %v390_v0, %v390_v0 }
  0x3e   : > { %v383_v23 = vadd.f32 %v382_v22, %v373_v62 }
  0x40   : > { %v384_v63 = vadd.f32 %v383_v23, %v380_v9 }
  0x42   : > { %385 = vst [vmem:[#allocation3] sm:$0x1] %v384_v63 }
  0x49   : > { %v391_v29 = vld [vmem:[#allocation3] sm:$0x1] }
  0x4a   : > { %v392_v36 = vmul.f32 0.00390625, %v391_v29 }
  0x4c   : > { %v394_v1 = vsub.f32 %v392_v36, %v393_v15 }
  0x4e   : > { %v395_v37 = vmax.f32 %v394_v1, 0.0 }
  0x50   : > { %v396_v4 = vadd.f32 1e-05, %v395_v37 }
  0x52   : > { %518 = vrsqrt.f32 %v396_v4 }
  0x5f   : > { %v519_v10 = vpop.eup %518 }
  0x60   : > { %v399_v42 = vmul.f32 %v519_v10, %v398_v6 }
  0x62   : > { %v401_v14 = vmul.f32 %v399_v42, %v390_v0 }
  0x64   : > { %v402_v48 = vsub.f32 %v400_v13, %v401_v14 }
  0x66   : > { %v407_v18 = vrot.slane %v402_v48, %v406_v17 }
  0x68   : > { %v410_v49 = vsel %vm409_vm0, %v399_v42, %v407_v18 }
  0x69   : > { %411 = vst [vmem:[%s199_s27] sm:$0x3] %v410_v49 }
  0x6a PF: > { %s13_s14 = sadd.s32 1, %s542_s14   ;;  %s697_s12 = smov %s538_s13 }
  0x6b   : > { %p10_p5 = scmp.ge.s32.totalorder %s13_s14, 4   ;;  %s698_s13 = smov %s700_s15 }
  0x6d   :  { %12 = sbr.rel (!%p10_p5) target bundleno = 2 (0x2), region = 70 }

// kernel: downsampling_module.3
= control target key start
LH: loop header
LB: loop body
LE: loop exit
PB: predicated region body
PF: predicated region fallthrough
CT: control target
= control target key end

     0   :  { %s2722_s18 = smov 0   ;;  %s2724_s19 = smov 0   ;;  %s3384_s0 = inlined_call_operand.vmem [shape: f32[2,8,8,512], index: 0, kind: input, shape index: {}]   ;;  %s3385_s1 = inlined_call_operand.vmem [shape: f32[2,2,128], index: 1, kind: input, shape index: {}]   ;;  %s3386_s2 = inlined_call_operand.vmem [shape: bf16[1152,128], index: 2, kind: input, shape index: {}]   ;;  %s3387_s3 = inlined_call_operand.vmem [shape: f32[1,128], index: 3, kind: input, shape index: {}]   ;;  %s3388_s4 = inlined_call_operand.vmem [shape: f32[2,8,8,512], index: 4, kind: output, shape index: {0}]   ;;  %s3389_s5 = inlined_call_operand.vmem [shape: f32[2,8,8,128], index: 5, kind: output, shape index: {1}]  }
   0x1   :  { %s2726_s20 = smov 0  }
   0x2 LB: > { %s28_s21 = sadd.s32 1, %s2685_s19  ;;  %p2182_p0 = scmp.ge.s32.totalorder %s2689_s20, 1  ;;  %s2689_s20 = sphi %s2726_s20, %s16_s20   ;;  %s2685_s19 = sphi %s2724_s19, %s3399_s19   ;;  %s2681_s18 = sphi %s2722_s18, %s3398_s18  }
   0x3   : > { %p30_p1 = scmp.ge.s32.totalorder %s28_s21, 2  ;;  %p223_p2 = scmp.lt.s32.totalorder %s2689_s20, 3 }
   0x5   : > { %s3401_s21 = smov (%p30_p1, %s28_s21), 0  ;;  %p224_p3 = pnand %p2182_p0, %p223_p2 }
   0x7   : > { %227 = sbr.rel (%p224_p3) target bundleno = 337 (0x151), region = 36 }
   0xc   : > { %v2595_v0 = vld [vmem:[%s3386_s2 + $0xf8] sm:$0xff]   ;;  %v2599_v4 = vld [vmem:[%s3386_s2 + $0xf0] sm:$0xff]   ;;  %v2603_v8 = vld [vmem:[%s3386_s2 + $0xe8] sm:$0xff]   ;;  %p275_p4 = scmp.lt.s32.totalorder %s2681_s18, 1  ;;  %v350_v21 = vlaneseq }
   0xd   : > { %v2596_v1 = vld [vmem:[%s3386_s2 + $0x78] sm:$0xff]   ;;  %2342 = vmatprep.subr.bf16.mxu0 %v2595_v0  ;;  %v2600_v5 = vld [vmem:[%s3386_s2 + $0x70] sm:$0xff]   ;;  %v2604_v9 = vld [vmem:[%s3386_s2 + $0x68] sm:$0xff]  }
   0xe   : > { %v2597_v2 = vld [vmem:[%s3386_s2 + $0xb8] sm:$0xff]   ;;  %2382 = vmatprep.subr.bf16.mxu1 %v2596_v1  ;;  %v2601_v6 = vld [vmem:[%s3386_s2 + $0xb0] sm:$0xff]   ;;  %v2605_v10 = vld [vmem:[%s3386_s2 + $0xa8] sm:$0xff]   ;;  %s3403_s18 = smov (!%p275_p4, %s2681_s18), 1  ;;  %v351_v26 = vshrl.u32 %v350_v21, 7 }
   0xf   : > { %v2598_v3 = vld [vmem:[%s3386_s2 + $0x38] sm:$0xff]   ;;  %2343 = vmatpush3.bf16.msra.mxu0 %v2597_v2  ;;  %v2602_v7 = vld [vmem:[%s3386_s2 + $0x30] sm:$0xff]   ;;  %v2606_v11 = vld [vmem:[%s3386_s2 + $0x28] sm:$0xff]   ;;  %s2309_s7 = sshll.u32 %s3403_s18, 8  ;;  %s2185_s10 = sshll.u32 %s3403_s18, 1 }
  0x10   : > { %2383 = vmatpush3.bf16.msra.mxu1 %v2598_v3  ;;  %2344 = vmatprep.subr.bf16.mxu0 %v2599_v4  ;;  %v2607_v12 = vld [vmem:[%s3386_s2 + $0xe0] sm:$0xff]   ;;  %v2611_v16 = vld [vmem:[%s3386_s2 + $0xd8] sm:$0xff]   ;;  %v2615_v20 = vld [vmem:[%s3386_s2 + $0xd0] sm:$0xff]   ;;  %v352_v31 = vsub.s32 0, %v351_v26  ;;  %s2843_s23 = scalar_lea.vmem %s3384_s0, %s2309_s7  ;;  %s288_s26 = scalar_lea.vmem %s3385_s1, %s2185_s10  ;;  %v388_v33 = vsub.s32 1, %v351_v26 }
  0x11   : > { %2384 = vmatprep.subr.bf16.mxu1 %v2600_v5  ;;  %v2608_v13 = vld [vmem:[%s3386_s2 + $0x60] sm:$0xff]   ;;  %v2612_v17 = vld [vmem:[%s3386_s2 + $0x58] sm:$0xff]   ;;  %v2616_v22 = vld [vmem:[%s3386_s2 + $0x50] sm:$0xff]   ;;  %s2894_s13 = scalar_lea.vmem %s3388_s4, %s2309_s7  ;;  %s2311_s9 = sshll.u32 %s3403_s18, 6 }
  0x12   : > { %v2609_v14 = vld [vmem:[%s3386_s2 + $0xa0] sm:$0xff]   ;;  %v2613_v18 = vld [vmem:[%s3386_s2 + $0x98] sm:$0xff]   ;;  %v2617_v23 = vld [vmem:[%s3386_s2 + $0x90] sm:$0xff]   ;;  %s3365_s14 = scalar_lea.vmem %s3389_s5, %s2311_s9 }
  0x13   : > { %2345 = vmatpush3.bf16.msra.mxu0 %v2601_v6  ;;  %v2610_v15 = vld [vmem:[%s3386_s2 + $0x20] sm:$0xff]   ;;  %v2614_v19 = vld [vmem:[%s3386_s2 + $0x18] sm:$0xff]   ;;  %v2618_v24 = vld [vmem:[%s3386_s2 + $0x10] sm:$0xff]   ;;  %v2691_v6 = vmov 0  }
  0x14   : > { %2385 = vmatpush3.bf16.msra.mxu1 %v2602_v7  ;;  %2346 = vmatprep.subr.bf16.mxu0 %v2603_v8  ;;  %v2619_v25 = vld [vmem:[%s3386_s2 + $0xc8] sm:$0xff]   ;;  %v2623_v30 = vld [vmem:[%s3386_s2 + $0xc0] sm:$0xff]   ;;  %v321_v37 = vld [vmem:[%s2843_s23 + $0x18] sm:$0xff]  ;;  %v2903_v7 = vcombine.high %v2691_v6, %v2691_v6 }
  0x15   : > { %2386 = vmatprep.subr.bf16.mxu1 %v2604_v9  ;;  %v2620_v27 = vld [vmem:[%s3386_s2 + $0x48] sm:$0xff]   ;;  %v2624_v32 = vld [vmem:[%s3386_s2 + $0x40] sm:$0xff]   ;;  %v325_v38 = vld [vmem:[%s2843_s23 + $0x38] sm:$0xff] }
  0x16   : > { %v2621_v28 = vld [vmem:[%s3386_s2 + $0x88] sm:$0xff]   ;;  %v2625_v34 = vld [vmem:[%s3386_s2 + $0x80] sm:$0xff]   ;;  %v320_v43 = vld [vmem:[%s2843_s23 + $0x10] sm:$0xff]  ;;  %v775_v26 = vshrl.u32 %v2903_v7, 16 }
  0x17   : > { %2347 = vmatpush3.bf16.msra.mxu0 %v2605_v10  ;;  %v2622_v29 = vld [vmem:[%s3386_s2 + $0x8] sm:$0xff]   ;;  %v2626_v35 = vld [vmem:[%s3386_s2] sm:$0xff]   ;;  %v324_v44 = vld [vmem:[%s2843_s23 + $0x30] sm:$0xff] }
  0x18   : > { %2387 = vmatpush3.bf16.msra.mxu1 %v2606_v11  ;;  %2348 = vmatprep.subr.bf16.mxu0 %v2607_v12  ;;  %v317_v36 = vld [vmem:[%s288_s26] sm:$0x3]  ;;  %v319_v41 = vld [vmem:[%s2843_s23 + $0x8] sm:$0xff]  ;;  %v2627_v51 = vld [vmem:[%s3386_s2 + $0x178] sm:$0xff]  }
  0x19   : > { %2388 = vmatprep.subr.bf16.mxu1 %v2608_v13  ;;  %v2856_v39 = vrot.slane %v317_v36, %v352_v31  ;;  %v2858_v40 = vrot.slane %v317_v36, %v388_v33  ;;  %v323_v42 = vld [vmem:[%s2843_s23 + $0x28] sm:$0xff]  ;;  %v318_v45 = vld [vmem:[%s2843_s23] sm:$0xff]  ;;  %v2879_v55 = vld [vmem:[%s3386_s2 + $0x1b8] sm:$0xff]  }
  0x1a   : > { %v322_v46 = vld [vmem:[%s2843_s23 + $0x20] sm:$0xff]  ;;  %v333_v21 = vld [vmem:[%s2843_s23 + $0x78] sm:$0xff]  ;;  %v332_v31 = vld [vmem:[%s2843_s23 + $0x70] sm:$0xff] }
  0x1b   : > { %2349 = vmatpush3.bf16.msra.mxu0 %v2609_v14  ;;  %v357_v47 = vmul.f32 %v2856_v39, %v321_v37  ;;  %v361_v48 = vmul.f32 %v2856_v39, %v325_v38  ;;  %v355_v49 = vmul.f32 %v2856_v39, %v319_v41  ;;  %v359_v50 = vmul.f32 %v2856_v39, %v323_v42  ;;  %v2631_v33 = vld [vmem:[%s3386_s2 + $0x1b0] sm:$0xff]   ;;  %v326_v37 = vld [vmem:[%s2843_s23 + $0x40] sm:$0xff] }
  0x1c   : > { %2389 = vmatpush3.bf16.msra.mxu1 %v2610_v15  ;;  %2350 = vmatprep.subr.bf16.mxu0 %v2611_v16  ;;  %v356_v52 = vmul.f32 %v2856_v39, %v320_v43  ;;  %v360_v53 = vmul.f32 %v2856_v39, %v324_v44  ;;  %v354_v54 = vmul.f32 %v2856_v39, %v318_v45  ;;  %v2629_v16 = vld [vmem:[%s3386_s2 + $0x138] sm:$0xff]  }
  0x1d   : > { %2390 = vmatprep.subr.bf16.mxu1 %v2612_v17  ;;  %v393_v56 = vadd.f32 %v2858_v40, %v357_v47  ;;  %v397_v57 = vadd.f32 %v2858_v40, %v361_v48  ;;  %v391_v58 = vadd.f32 %v2858_v40, %v355_v49  ;;  %v395_v59 = vadd.f32 %v2858_v40, %v359_v50  ;;  %v2630_v17 = vld [vmem:[%s3386_s2 + $0x170] sm:$0xff]   ;;  %v2633_v48 = vld [vmem:[%s3386_s2 + $0x168] sm:$0xff]  }
  0x1e   : > { %v392_v60 = vadd.f32 %v2858_v40, %v356_v52  ;;  %v396_v61 = vadd.f32 %v2858_v40, %v360_v53  ;;  %v358_v62 = vmul.f32 %v2856_v39, %v322_v46  ;;  %v390_v5 = vadd.f32 %v2858_v40, %v354_v54 }
  0x1f   : > { %2351 = vmatpush3.bf16.msra.mxu0 %v2613_v18  ;;  %vm425_vm0 = vcmp.ge.f32.partialorder %v393_v56, 0.0  ;;  %vm429_vm1 = vcmp.ge.f32.partialorder %v397_v57, 0.0  ;;  %v457_v63 = vmul.f32 0.01, %v393_v56  ;;  %v461_v0 = vmul.f32 0.01, %v397_v57 }
  0x20   : > { %2391 = vmatpush3.bf16.msra.mxu1 %v2614_v19  ;;  %2352 = vmatprep.subr.bf16.mxu0 %v2615_v20  ;;  %vm423_vm2 = vcmp.ge.f32.partialorder %v391_v58, 0.0  ;;  %vm427_vm3 = vcmp.ge.f32.partialorder %v395_v59, 0.0  ;;  %v455_v1 = vmul.f32 0.01, %v391_v58  ;;  %v459_v2 = vmul.f32 0.01, %v395_v59 }
  0x21   : > { %2392 = vmatprep.subr.bf16.mxu1 %v2616_v22  ;;  %v2896_v3 = vsel %vm425_vm0, %v393_v56, %v457_v63  ;;  %v2898_v4 = vsel %vm429_vm1, %v397_v57, %v461_v0  ;;  %vm424_vm4 = vcmp.ge.f32.partialorder %v392_v60, 0.0  ;;  %vm428_vm5 = vcmp.ge.f32.partialorder %v396_v61, 0.0  ;;  %v329_v20 = vld [vmem:[%s2843_s23 + $0x58] sm:$0xff]  ;;  %v327_v22 = vld [vmem:[%s2843_s23 + $0x48] sm:$0xff]  ;;  %v330_v56 = vld [vmem:[%s2843_s23 + $0x60] sm:$0xff] }
  0x22   : > { %521 = vst [vmem:[%s2894_s13 + $0x18] sm:$0xff] %v2896_v3  ;;  %525 = vst [vmem:[%s2894_s13 + $0x38] sm:$0xff] %v2898_v4  ;;  %v2321_v8 = vpack.c.bf16 %v2898_v4, %v2896_v3  ;;  %v487_v9 = vsel %vm423_vm2, %v391_v58, %v455_v1  ;;  %v491_v10 = vsel %vm427_vm3, %v395_v59, %v459_v2  ;;  %v456_v11 = vmul.f32 0.01, %v392_v60  ;;  %v2634_v57 = vld [vmem:[%s3386_s2 + $0x1a8] sm:$0xff]  }
  0x23   : > { %2353 = vmatpush3.bf16.msra.mxu0 %v2617_v23  ;;  %519 = vst [vmem:[%s2894_s13 + $0x8] sm:$0xff] %v487_v9  ;;  %v460_v12 = vmul.f32 0.01, %v396_v61  ;;  %v394_v13 = vadd.f32 %v2858_v40, %v358_v62  ;;  %523 = vst [vmem:[%s2894_s13 + $0x28] sm:$0xff] %v491_v10  ;;  %v2914_v14 = vpack.c.bf16 %v487_v9, %v487_v9  ;;  %vm422_vm6 = vcmp.ge.f32.partialorder %v390_v5, 0.0 }
  0x24   : > { %2393 = vmatpush3.bf16.msra.mxu1 %v2618_v24  ;;  %2354 = vmatprep.subr.bf16.mxu0 %v2619_v25  ;;  %v2329_v15 = vpack.c.bf16 %v491_v10, %v487_v9  ;;  %v2922_v18 = vsel %vm424_vm4, %v392_v60, %v456_v11  ;;  %v331_v24 = vld [vmem:[%s2843_s23 + $0x68] sm:$0xff]  ;;  %v328_v25 = vld [vmem:[%s2843_s23 + $0x50] sm:$0xff]  ;;  %v363_v36 = vmul.f32 %v2856_v39, %v327_v22  ;;  %v2637_v11 = vld [vmem:[%s3386_s2 + $0x1a0] sm:$0xff]  }
  0x25   : > { %2394 = vmatprep.subr.bf16.mxu1 %v2620_v27  ;;  %1086 = vmatprep.mubr.bf16.mxu0 %v2321_v8  ;;  %v2924_v19 = vsel %vm428_vm5, %v396_v61, %v460_v12  ;;  %520 = vst [vmem:[%s2894_s13 + $0x10] sm:$0xff] %v2922_v18  ;;  %v2938_v27 = vpack.c.bf16 %v491_v10, %v491_v10  ;;  %vm426_vm7 = vcmp.ge.f32.partialorder %v394_v13, 0.0  ;;  %v621_v60 = vshll.u32 %v2914_v14, 16 }
  0x26   : > { %1263 = vmatprep.mubr.bf16.mxu1 %v2329_v15  ;;  %524 = vst [vmem:[%s2894_s13 + $0x30] sm:$0xff] %v2924_v19  ;;  %v2320_v23 = vpack.c.bf16 %v2924_v19, %v2922_v18  ;;  %v367_v42 = vmul.f32 %v2856_v39, %v331_v24  ;;  %v364_v43 = vmul.f32 %v2856_v39, %v328_v25 }
  0x27   : > { %2355 = vmatpush3.bf16.msra.mxu0 %v2621_v28  ;;  %v454_v28 = vmul.f32 0.01, %v390_v5  ;;  %v399_v47 = vadd.f32 %v2858_v40, %v363_v36  ;;  %v368_v50 = vmul.f32 %v2856_v39, %v332_v31  ;;  %v362_v52 = vmul.f32 %v2856_v39, %v326_v37  ;;  %v340_v37 = vld [vmem:[%s2843_s23 + $0xb0] sm:$0xff] }
  0x28   : > { %2395 = vmatpush3.bf16.msra.mxu1 %v2622_v29  ;;  %2356 = vmatprep.subr.bf16.mxu0 %v2623_v30  ;;  %v458_v29 = vmul.f32 0.01, %v394_v13  ;;  %v2632_v30 = vld [vmem:[%s3386_s2 + $0x130] sm:$0xff]   ;;  %v403_v49 = vadd.f32 %v2858_v40, %v367_v42  ;;  %v625_v0 = vshrl.u32 %v2938_v27, 16  ;;  %v628_v12 = vshll.u32 %v2938_v27, 16 }
  0x29   : > { %2396 = vmatprep.subr.bf16.mxu1 %v2624_v32  ;;  %v618_v32 = vshrl.u32 %v2914_v14, 16  ;;  %v486_v38 = vsel %vm422_vm6, %v390_v5, %v454_v28  ;;  %vm431_vm10 = vcmp.ge.f32.partialorder %v399_v47, 0.0  ;;  %v463_v58 = vmul.f32 0.01, %v399_v47  ;;  %v2636_v5 = vld [vmem:[%s3386_s2 + $0x160] sm:$0xff]   ;;  %v335_v28 = vld [vmem:[%s2843_s23 + $0x88] sm:$0xff] }
  0x2a   : > { %v490_v41 = vsel %vm426_vm7, %v394_v13, %v458_v29  ;;  %518 = vst [vmem:[%s2894_s13] sm:$0xff] %v486_v38  ;;  %vm435_vm11 = vcmp.ge.f32.partialorder %v403_v49, 0.0  ;;  %v467_v59 = vmul.f32 0.01, %v403_v49  ;;  %v404_v63 = vadd.f32 %v2858_v40, %v368_v50 }
  0x2b   : > { %2357 = vmatpush3.bf16.msra.mxu0 %v2625_v34  ;;  %v365_v34 = vmul.f32 %v2856_v39, %v329_v20  ;;  %522 = vst [vmem:[%s2894_s13 + $0x20] sm:$0xff] %v490_v41  ;;  %v2328_v44 = vpack.c.bf16 %v490_v41, %v486_v38  ;;  %v495_v2 = vsel %vm431_vm10, %v399_v47, %v463_v58  ;;  %v337_v20 = vld [vmem:[%s2843_s23 + $0x98] sm:$0xff]  ;;  %v3008_v22 = vrot.slane %v618_v32, 7 }
  0x2c   : > { %2397 = vmatpush3.bf16.msra.mxu1 %v2626_v35  ;;  %2422 = vmatprep.subr.bf16.mxu0 %v2627_v51  ;;  %v369_v35 = vmul.f32 %v2856_v39, %v333_v21  ;;  %v400_v51 = vadd.f32 %v2858_v40, %v364_v43  ;;  %v499_v8 = vsel %vm435_vm11, %v403_v49, %v467_v59  ;;  %vm436_vm13 = vcmp.ge.f32.partialorder %v404_v63, 0.0  ;;  %v341_v21 = vld [vmem:[%s2843_s23 + $0xb8] sm:$0xff]  ;;  %v2642_v59 = vld [vmem:[%s3386_s2 + $0x150] sm:$0xff]  }
  0x2d   : > { %2498 = vmatprep.subr.bf16.mxu1 %v2879_v55  ;;  %v401_v45 = vadd.f32 %v2858_v40, %v365_v34  ;;  %527 = vst [vmem:[%s2894_s13 + $0x48] sm:$0xff] %v495_v2  ;;  %v2993_v9 = vpack.c.bf16 %v495_v2, %v495_v2  ;;  %531 = vst [vmem:[%s2894_s13 + $0x68] sm:$0xff] %v499_v8  ;;  %v2331_v13 = vpack.c.bf16 %v499_v8, %v495_v2  ;;  %v336_v34 = vld [vmem:[%s2843_s23 + $0x90] sm:$0xff]  ;;  %v2639_v38 = vld [vmem:[%s3386_s2 + $0x158] sm:$0xff]   ;;  %vm681_vm6 = vcmask 1040384  }
  0x2e   : > { %1087 = vmatmul.mubr.bf16.vlgmr.msra.gmra.mxu0 %v2320_v23  ;;  %v405_v46 = vadd.f32 %v2858_v40, %v369_v35  ;;  %vm432_vm12 = vcmp.ge.f32.partialorder %v400_v51, 0.0  ;;  %v464_v10 = vmul.f32 0.01, %v400_v51  ;;  %v468_v15 = vmul.f32 0.01, %v404_v63  ;;  %v2640_v49 = vld [vmem:[%s3386_s2 + $0x198] sm:$0xff]  }
  0x2f   : > { %2423 = vmatpush3.bf16.msra.mxu0 %v2629_v16  ;;  %1264 = vmatmul.mubr.bf16.vlgmr.msra.gmra.mxu1 %v2328_v44  ;;  %vm433_vm8 = vcmp.ge.f32.partialorder %v401_v45, 0.0  ;;  %v465_v53 = vmul.f32 0.01, %v401_v45  ;;  %v366_v16 = vmul.f32 %v2856_v39, %v330_v56  ;;  %v3010_v23 = vpack.c.bf16 %v499_v8, %v499_v8  ;;  %v334_v8 = vld [vmem:[%s2843_s23 + $0x80] sm:$0xff] }
  0x30   : > { %2424 = vmatprep.subr.bf16.mxu0 %v2630_v17  ;;  %vm437_vm9 = vcmp.ge.f32.partialorder %v405_v46, 0.0  ;;  %v469_v54 = vmul.f32 0.01, %v405_v46  ;;  %2499 = vmatpush3.bf16.msra.mxu1 %v2879_v55  ;;  %v2635_v55 = vld [vmem:[%s3386_s2 + $0x128] sm:$0xff]   ;;  %v2638_v17 = vld [vmem:[%s3386_s2 + $0x120] sm:$0xff]   ;;  %v3013_v24 = vsel %vm432_vm12, %v400_v51, %v464_v10  ;;  %v398_v25 = vadd.f32 %v2858_v40, %v362_v52  ;;  %v2643_v10 = vld [vmem:[%s3386_s2 + $0x190] sm:$0xff]  }
  0x31   : > { %2500 = vmatprep.subr.bf16.mxu1 %v2631_v33  ;;  %v2973_v61 = vsel %vm433_vm8, %v401_v45, %v465_v53  ;;  %v3017_v29 = vrot.slane %v625_v0, 7  ;;  %1271 = vmatprep.mubr.bf16.mxu1 %v2331_v13  ;;  %v3021_v31 = vsel %vm436_vm13, %v404_v63, %v468_v15  ;;  %528 = vst [vmem:[%s2894_s13 + $0x50] sm:$0xff] %v3013_v24  ;;  %v3037_v41 = vunpack.c.h.b16 %v2691_v6  ;;  %v2641_v53 = vld [vmem:[%s3386_s2 + $0x118] sm:$0xff]  }
  0x32   : > { %v2975_v62 = vsel %vm437_vm9, %v405_v46, %v469_v54  ;;  %529 = vst [vmem:[%s2894_s13 + $0x58] sm:$0xff] %v2973_v61  ;;  %v402_v32 = vadd.f32 %v2858_v40, %v366_v16  ;;  %532 = vst [vmem:[%s2894_s13 + $0x70] sm:$0xff] %v3021_v31  ;;  %v2322_v35 = vpack.c.bf16 %v3021_v31, %v3013_v24  ;;  %vm430_vm14 = vcmp.ge.f32.partialorder %v398_v25, 0.0  ;;  %v338_v16 = vld [vmem:[%s2843_s23 + $0xa0] sm:$0xff] }
  0x33   : > { %2425 = vmatpush3.bf16.msra.mxu0 %v2632_v30  ;;  %533 = vst [vmem:[%s2894_s13 + $0x78] sm:$0xff] %v2975_v62  ;;  %v2323_v1 = vpack.c.bf16 %v2975_v62, %v2973_v61  ;;  %v632_v30 = vshrl.u32 %v2993_v9, 16  ;;  %v462_v36 = vmul.f32 0.01, %v398_v25  ;;  %v635_v42 = vshll.u32 %v2993_v9, 16 }
  0x34   : > { %2426 = vmatprep.subr.bf16.mxu0 %v2633_v48  ;;  %2501 = vmatpush3.bf16.msra.mxu1 %v2631_v33  ;;  %v339_v33 = vld [vmem:[%s2843_s23 + $0xa8] sm:$0xff]  ;;  %vm434_vm15 = vcmp.ge.f32.partialorder %v402_v32, 0.0  ;;  %v466_v43 = vmul.f32 0.01, %v402_v32  ;;  %v373_v44 = vmul.f32 %v2856_v39, %v337_v20  ;;  %v3043_v45 = vpack.c.bf16 %v2896_v3, %v2896_v3  ;;  %v345_v20 = vld [vmem:[%s2843_s23 + $0xd8] sm:$0xff] }
  0x35   : > { %1094 = vmatprep.mubr.bf16.mxu0 %v2323_v1  ;;  %2502 = vmatprep.subr.bf16.mxu1 %v2634_v57  ;;  %v639_v46 = vshrl.u32 %v3010_v23, 16  ;;  %v494_v47 = vsel %vm430_vm14, %v398_v25, %v462_v36  ;;  %v377_v48 = vmul.f32 %v2856_v39, %v341_v21  ;;  %v642_v50 = vshll.u32 %v3010_v23, 16  ;;  %v2645_v36 = vld [vmem:[%s3386_s2 + $0x148] sm:$0xff]  }
  0x36   : > { %1095 = vmatmul.mubr.bf16.gmra.mxu0 %v2322_v35  ;;  %v498_v51 = vsel %vm434_vm15, %v402_v32, %v466_v43  ;;  %526 = vst [vmem:[%s2894_s13 + $0x40] sm:$0xff] %v494_v47  ;;  %v409_v52 = vadd.f32 %v2858_v40, %v373_v44  ;;  %v371_v3 = vmul.f32 %v2856_v39, %v335_v28  ;;  %v349_v28 = vld [vmem:[%s2843_s23 + $0xf8] sm:$0xff]  ;;  %v343_v32 = vld [vmem:[%s2843_s23 + $0xc8] sm:$0xff]  ;;  %vm682_vm7 = vsmask.f32 256 }
  0x37   : > { %2427 = vmatpush3.bf16.msra.mxu0 %v2635_v55  ;;  %530 = vst [vmem:[%s2894_s13 + $0x60] sm:$0xff] %v498_v51  ;;  %v2330_v54 = vpack.c.bf16 %v498_v51, %v494_v47  ;;  %v413_v56 = vadd.f32 %v2858_v40, %v377_v48  ;;  %v372_v58 = vmul.f32 %v2856_v39, %v336_v34  ;;  %v347_v47 = vld [vmem:[%s2843_s23 + $0xe8] sm:$0xff]  ;;  %v3106_v48 = vrot.slane %v632_v30, 7 }
  0x38   : > { %2428 = vmatprep.subr.bf16.mxu0 %v2636_v5  ;;  %2503 = vmatpush3.bf16.msra.mxu1 %v2634_v57  ;;  %v375_v57 = vmul.f32 %v2856_v39, %v339_v33  ;;  %vm441_vm0 = vcmp.ge.f32.partialorder %v409_v52, 0.0  ;;  %v473_v63 = vmul.f32 0.01, %v409_v52  ;;  %v407_v55 = vadd.f32 %v2858_v40, %v371_v3  ;;  %v2646_v3 = vld [vmem:[%s3386_s2 + $0x188] sm:$0xff]  }
  0x39   : > { %2504 = vmatprep.subr.bf16.mxu1 %v2637_v11  ;;  %v376_v0 = vmul.f32 %v2856_v39, %v340_v37  ;;  %1272 = vmatmul.mubr.bf16.gmra.mxu1 %v2330_v54  ;;  %vm445_vm1 = vcmp.ge.f32.partialorder %v413_v56, 0.0  ;;  %v477_v1 = vmul.f32 0.01, %v413_v56  ;;  %v408_v5 = vadd.f32 %v2858_v40, %v372_v58 }
  0x3a   : > { %v411_v2 = vadd.f32 %v2858_v40, %v375_v57  ;;  %vm439_vm2 = vcmp.ge.f32.partialorder %v407_v55, 0.0  ;;  %v471_v13 = vmul.f32 0.01, %v407_v55  ;;  %v552_v37 = vpack.c.bf16 %v2922_v18, %v2922_v18  ;;  %v2647_v57 = vld [vmem:[%s3386_s2 + $0x108] sm:$0xff]  }
  0x3b   : > { %2429 = vmatpush3.bf16.msra.mxu0 %v2638_v17  ;;  %v412_v15 = vadd.f32 %v2858_v40, %v376_v0  ;;  %v2644_v17 = vld [vmem:[%s3386_s2 + $0x110] sm:$0xff]   ;;  %v3080_v21 = vsel %vm445_vm1, %v413_v56, %v477_v1  ;;  %vm440_vm4 = vcmp.ge.f32.partialorder %v408_v5, 0.0  ;;  %v472_v35 = vmul.f32 0.01, %v408_v5  ;;  %v2648_v1 = vld [vmem:[%s3386_s2 + $0x140] sm:$0xff]  }
  0x3c   : > { %2430 = vmatprep.subr.bf16.mxu0 %v2639_v38  ;;  %2505 = vmatpush3.bf16.msra.mxu1 %v2637_v11  ;;  %v3072_v11 = vsel %vm441_vm0, %v409_v52, %v473_v63  ;;  %vm443_vm3 = vcmp.ge.f32.partialorder %v411_v2, 0.0  ;;  %v475_v25 = vmul.f32 0.01, %v411_v2  ;;  %541 = vst [vmem:[%s2894_s13 + $0xb8] sm:$0xff] %v3080_v21  ;;  %v3091_v34 = vsel %vm439_vm2, %v407_v55, %v471_v13  ;;  %v344_v0 = vld [vmem:[%s2843_s23 + $0xd0] sm:$0xff]  ;;  %vm3201_vm0 = vmand %vm681_vm6, %vm682_vm7 }
  0x3d   : > { %2506 = vmatprep.subr.bf16.mxu1 %v2640_v49  ;;  %537 = vst [vmem:[%s2894_s13 + $0x98] sm:$0xff] %v3072_v11  ;;  %v2325_v33 = vpack.c.bf16 %v3080_v21, %v3072_v11  ;;  %vm444_vm5 = vcmp.ge.f32.partialorder %v412_v15, 0.0  ;;  %535 = vst [vmem:[%s2894_s13 + $0x88] sm:$0xff] %v3091_v34  ;;  %v476_v43 = vmul.f32 0.01, %v412_v15  ;;  %v370_v44 = vmul.f32 %v2856_v39, %v334_v8  ;;  %v348_v8 = vld [vmem:[%s2843_s23 + $0xf0] sm:$0xff] }
  0x3e   : > { %v3098_v38 = vsel %vm443_vm3, %v411_v2, %v475_v25  ;;  %v3113_v51 = vsel %vm440_vm4, %v408_v5, %v472_v35  ;;  %v374_v52 = vmul.f32 %v2856_v39, %v338_v16  ;;  %v381_v54 = vmul.f32 %v2856_v39, %v345_v20 }
  0x3f   : > { %2431 = vmatpush3.bf16.msra.mxu0 %v2641_v53  ;;  %1102 = vmatprep.mubr.bf16.mxu0 %v2325_v33  ;;  %539 = vst [vmem:[%s2894_s13 + $0xa8] sm:$0xff] %v3098_v38  ;;  %v3120_v53 = vsel %vm444_vm5, %v412_v15, %v476_v43  ;;  %536 = vst [vmem:[%s2894_s13 + $0x90] sm:$0xff] %v3113_v51  ;;  %v406_v30 = vadd.f32 %v2858_v40, %v370_v44  ;;  %v3132_v58 = vrot.slane %v639_v46, 7 }
  0x40   : > { %2432 = vmatprep.subr.bf16.mxu0 %v2642_v59  ;;  %2507 = vmatpush3.bf16.msra.mxu1 %v2640_v49  ;;  %v2333_v49 = vpack.c.bf16 %v3098_v38, %v3091_v34  ;;  %v385_v56 = vmul.f32 %v2856_v39, %v349_v28  ;;  %540 = vst [vmem:[%s2894_s13 + $0xb0] sm:$0xff] %v3120_v53  ;;  %v342_v28 = vld [vmem:[%s2843_s23 + $0xc0] sm:$0xff] }
  0x41   : > { %2508 = vmatprep.subr.bf16.mxu1 %v2643_v10  ;;  %v2324_v59 = vpack.c.bf16 %v3120_v53, %v3113_v51  ;;  %v410_v63 = vadd.f32 %v2858_v40, %v374_v52  ;;  %v379_v55 = vmul.f32 %v2856_v39, %v343_v32  ;;  %vm438_vm8 = vcmp.ge.f32.partialorder %v406_v30, 0.0 }
  0x42   : > { %1279 = vmatprep.mubr.bf16.mxu1 %v2333_v49  ;;  %v470_v2 = vmul.f32 0.01, %v406_v30  ;;  %v417_v46 = vadd.f32 %v2858_v40, %v381_v54  ;;  %v421_v5 = vadd.f32 %v2858_v40, %v385_v56  ;;  %v383_v15 = vmul.f32 %v2856_v39, %v347_v47  ;;  %v3176_v54 = vld [vmem:[%s3386_s2 + $0x238] sm:$0xff]  }
  0x43   : > { %2433 = vmatpush3.bf16.msra.mxu0 %v2644_v17  ;;  %vm442_vm9 = vcmp.ge.f32.partialorder %v410_v63, 0.0  ;;  %v474_v13 = vmul.f32 0.01, %v410_v63  ;;  %v415_v16 = vadd.f32 %v2858_v40, %v379_v55  ;;  %v2650_v17 = vld [vmem:[%s3386_s2 + $0x100] sm:$0xff]   ;;  %v380_v49 = vmul.f32 %v2856_v39, %v344_v0 }
  0x44   : > { %2509 = vmatpush3.bf16.msra.mxu1 %v2643_v10  ;;  %2434 = vmatprep.subr.bf16.mxu0 %v2645_v36  ;;  %v2649_v10 = vld [vmem:[%s3386_s2 + $0x180] sm:$0xff]   ;;  %v502_v20 = vsel %vm438_vm8, %v406_v30, %v470_v2  ;;  %vm449_vm10 = vcmp.ge.f32.partialorder %v417_v46, 0.0  ;;  %vm453_vm11 = vcmp.ge.f32.partialorder %v421_v5, 0.0  ;;  %v481_v25 = vmul.f32 0.01, %v417_v46  ;;  %v3161_v36 = vld [vmem:[%s3386_s2 + $0x1f8] sm:$0xff]  }
  0x45   : > { %2510 = vmatprep.subr.bf16.mxu1 %v2646_v3  ;;  %1103 = vmatmul.mubr.bf16.gmra.mxu0 %v2324_v59  ;;  %v506_v32 = vsel %vm442_vm9, %v410_v63, %v474_v13  ;;  %534 = vst [vmem:[%s2894_s13 + $0x80] sm:$0xff] %v502_v20  ;;  %v485_v33 = vmul.f32 0.01, %v421_v5  ;;  %v419_v35 = vadd.f32 %v2858_v40, %v383_v15  ;;  %vm447_vm12 = vcmp.ge.f32.partialorder %v415_v16, 0.0  ;;  %v346_v63 = vld [vmem:[%s2843_s23 + $0xe0] sm:$0xff] }
  0x46   : > { %538 = vst [vmem:[%s2894_s13 + $0xa0] sm:$0xff] %v506_v32  ;;  %v2332_v43 = vpack.c.bf16 %v506_v32, %v502_v20  ;;  %v3164_v44 = vsel %vm449_vm10, %v417_v46, %v481_v25  ;;  %v479_v47 = vmul.f32 0.01, %v415_v16  ;;  %v384_v30 = vmul.f32 %v2856_v39, %v348_v8 }
  0x47   : > { %2435 = vmatpush3.bf16.msra.mxu0 %v2647_v57  ;;  %v3168_v52 = vsel %vm453_vm11, %v421_v5, %v485_v33  ;;  %545 = vst [vmem:[%s2894_s13 + $0xd8] sm:$0xff] %v3164_v44  ;;  %vm451_vm13 = vcmp.ge.f32.partialorder %v419_v35, 0.0  ;;  %v416_v59 = vadd.f32 %v2858_v40, %v380_v49  ;;  %v604_v55 = vunpack.c.l.b16 %v3043_v45 }
  0x48   : > { %2511 = vmatpush3.bf16.msra.mxu1 %v2646_v3  ;;  %2436 = vmatprep.subr.bf16.mxu0 %v2648_v1  ;;  %v483_v3 = vmul.f32 0.01, %v419_v35  ;;  %549 = vst [vmem:[%s2894_s13 + $0xf8] sm:$0xff] %v3168_v52  ;;  %v2327_v56 = vpack.c.bf16 %v3168_v52, %v3164_v44  ;;  %v511_v57 = vsel %vm447_vm12, %v415_v16, %v479_v47 }
  0x49   : > { %2512 = vmatprep.subr.bf16.mxu1 %v2649_v10  ;;  %1280 = vmatmul.mubr.bf16.gmra.mxu1 %v2332_v43  ;;  %v3189_v0 = vor.u32 %v635_v42, %v3106_v48  ;;  %543 = vst [vmem:[%s2894_s13 + $0xc8] sm:$0xff] %v511_v57  ;;  %v420_v2 = vadd.f32 %v2858_v40, %v384_v30  ;;  %vm448_vm14 = vcmp.ge.f32.partialorder %v416_v59, 0.0  ;;  %v480_v13 = vmul.f32 0.01, %v416_v59 }
  0x4a   : > { %v515_v1 = vsel %vm451_vm13, %v419_v35, %v483_v3  ;;  %v378_v46 = vmul.f32 %v2856_v39, %v342_v28  ;;  %v567_v5 = vpack.c.bf16 %v3091_v34, %v3091_v34  ;;  %1110 = vmatprep.mubr.bf16.mxu0 %v2327_v56  ;;  %v382_v42 = vmul.f32 %v2856_v39, %v346_v63 }
  0x4b   : > { %2437 = vmatpush3.bf16.msra.mxu0 %v2650_v17  ;;  %547 = vst [vmem:[%s2894_s13 + $0xe8] sm:$0xff] %v515_v1  ;;  %v2335_v8 = vpack.c.bf16 %v515_v1, %v511_v57  ;;  %vm452_vm15 = vcmp.ge.f32.partialorder %v420_v2, 0.0  ;;  %v484_v9 = vmul.f32 0.01, %v420_v2  ;;  %v571_v34 = vpack.c.bf16 %v3098_v38, %v3098_v38 }
  0x4c   : > { %2513 = vmatpush3.bf16.msra.mxu1 %v2649_v10  ;;  %v414_v48 = vadd.f32 %v2858_v40, %v378_v46  ;;  %2522 = vmatprep.subr.bf16.mxu0 %v3161_v36  ;;  %v3209_v10 = vsel %vm448_vm14, %v416_v59, %v480_v13  ;;  %v1330_v39 = vpack.c.b16 %v604_v55, %v3037_v41  ;;  %v686_v35 = vsel %vm3201_vm0, 0, %v3189_v0 }
  0x4d   : > { %2546 = vmatprep.subr.bf16.mxu1 %v3176_v54  ;;  %1287 = vmatprep.mubr.bf16.mxu1 %v2335_v8  ;;  %v623_v16 = vor.u32 %v621_v60, %v3008_v22  ;;  %v516_v17 = vsel %vm452_vm15, %v420_v2, %v484_v9  ;;  %544 = vst [vmem:[%s2894_s13 + $0xd0] sm:$0xff] %v3209_v10  ;;  %v646_v43 = vshrl.u32 %v567_v5, 16  ;;  %v649_v49 = vshll.u32 %v567_v5, 16 }
  0x4e   : > { %v418_v20 = vadd.f32 %v2858_v40, %v382_v42  ;;  %vm446_vm1 = vcmp.ge.f32.partialorder %v414_v48, 0.0  ;;  %v478_v25 = vmul.f32 0.01, %v414_v48  ;;  %v575_v28 = vpack.c.bf16 %v511_v57, %v511_v57  ;;  %548 = vst [vmem:[%s2894_s13 + $0xf0] sm:$0xff] %v516_v17 }
  0x4f   : > { %v2326_v38 = vpack.c.bf16 %v516_v17, %v3209_v10  ;;  %v630_v41 = vor.u32 %v628_v12, %v3017_v29  ;;  %v684_v14 = vsel %vm3201_vm0, 0, %v623_v16  ;;  %v579_v60 = vpack.c.bf16 %v515_v1, %v515_v1 }
  0x50   : > { %vm450_vm2 = vcmp.ge.f32.partialorder %v418_v20, 0.0  ;;  %v482_v22 = vmul.f32 0.01, %v418_v20  ;;  %v510_v32 = vsel %vm446_vm1, %v414_v48, %v478_v25  ;;  %v693_v40 = vshrl.u32 %v3043_v45, 16 }
  0x51   : > { %v644_v33 = vor.u32 %v642_v50, %v3132_v58  ;;  %1111 = vmatmul.mubr.bf16.gmra.mxu0 %v2326_v38  ;;  %542 = vst [vmem:[%s2894_s13 + $0xc0] sm:$0xff] %v510_v32  ;;  %v685_v27 = vsel %vm3201_vm0, 0, %v630_v41  ;;  %v653_v3 = vshrl.u32 %v571_v34, 16  ;;  %v656_v30 = vshll.u32 %v571_v34, 16 }
  0x52   : > { %v514_v12 = vsel %vm450_vm2, %v418_v20, %v482_v22  ;;  %1473 = vmatprep.mubr.bf16.mxu0 %v1330_v39  ;;  %v2270_v29 = vcombine.low %v684_v14, %v685_v27  ;;  %v2247_v23 = vcombine.low %v2691_v6, %v552_v37  ;;  %v648_v50 = vrot.slane %v646_v43, 7  ;;  %v2653_v6 = vld [vmem:[%s3386_s2 + $0x1f0] sm:$0xff]  }
  0x53   : > { %546 = vst [vmem:[%s2894_s13 + $0xe0] sm:$0xff] %v514_v12  ;;  %v2334_v47 = vpack.c.bf16 %v514_v12, %v510_v32  ;;  %v660_v58 = vshrl.u32 %v575_v28, 16  ;;  %v667_v56 = vshrl.u32 %v579_v60, 16  ;;  %v687_v57 = vsel %vm3201_vm0, 0, %v644_v33  ;;  %v2659_v32 = vld [vmem:[%s3386_s2 + $0x1d8] sm:$0xff]  }
  0x54   : > { %v655_v59 = vrot.slane %v653_v3, 7  ;;  %v663_v63 = vshll.u32 %v575_v28, 16  ;;  %v670_v55 = vshll.u32 %v579_v60, 16  ;;  %v2337_v0 = vpack.c.bf16 %v2973_v61, %v2898_v4 }
  0x55   : > { %1288 = vmatmul.mubr.bf16.gmra.mxu1 %v2334_v47  ;;  %v651_v1 = vor.u32 %v649_v49, %v648_v50  ;;  %v662_v2 = vrot.slane %v660_v58, 7  ;;  %v669_v46 = vrot.slane %v667_v56, 7  ;;  %v778_v37 = vshll.u32 %v2903_v7, 16  ;;  %v2654_v7 = vld [vmem:[%s3386_s2 + $0x230] sm:$0xff]  }
  0x56   : > { %2514 = vmatprep.mubr.bf16.mxu1 %v2270_v29  ;;  %v658_v18 = vor.u32 %v656_v30, %v655_v59  ;;  %v695_v5 = vrot.slane %v693_v40, 7  ;;  %v777_v8 = vrot.slane %v775_v26, 7  ;;  %v2271_v13 = vcombine.low %v686_v35, %v687_v57  ;;  %v2655_v26 = vld [vmem:[%s3386_s2 + $0x1e8] sm:$0xff]   ;;  %v2661_v47 = vld [vmem:[%s3386_s2 + $0x1d0] sm:$0xff]  }
  0x57   : > { %v688_v9 = vsel %vm3201_vm0, 0, %v651_v1  ;;  %v665_v48 = vor.u32 %v663_v63, %v662_v2  ;;  %v672_v34 = vor.u32 %v670_v55, %v669_v46  ;;  %v696_v39 = vshll.u32 %v3043_v45, 16  ;;  %v2663_v59 = vld [vmem:[%s3386_s2 + $0x1c8] sm:$0xff]  }
  0x58   : > { %v689_v42 = vsel %vm3201_vm0, 0, %v658_v18  ;;  %v557_v17 = vpack.c.bf16 %v2898_v4, %v2898_v4  ;;  %v780_v25 = vor.u32 %v778_v37, %v777_v8  ;;  %v2656_v4 = vld [vmem:[%s3386_s2 + $0x228] sm:$0xff]   ;;  %v565_v22 = vpack.c.bf16 %v2975_v62, %v2975_v62 }
  0x59   : > { %1474 = vmatmul.mubr.bf16.vlgmr.msra.gmra.mxu0 %v2247_v23  ;;  %v2272_v16 = vcombine.low %v688_v9, %v689_v42  ;;  %v698_v20 = vor.u32 %v696_v39, %v695_v5  ;;  %v690_v45 = vsel %vm3201_vm0, 0, %v665_v48  ;;  %v691_v28 = vsel %vm3201_vm0, 0, %v672_v34  ;;  %v2664_v37 = vld [vmem:[%s3386_s2 + $0x208] sm:$0xff]   ;;  %v2665_v5 = vld [vmem:[%s3386_s2 + $0x1c0] sm:$0xff]  }
  0x5a   : > { %2523 = vmatpush3.bf16.msra.mxu0 %v3161_v36  ;;  %1481 = vmatprep.mubr.bf16.mxu0 %v2337_v0  ;;  %v2336_v36 = vpack.c.bf16 %v3013_v24, %v2924_v19  ;;  %v2657_v19 = vld [vmem:[%s3386_s2 + $0x1e0] sm:$0xff]   ;;  %v561_v24 = vpack.c.bf16 %v2973_v61, %v2973_v61  ;;  %v2273_v38 = vcombine.low %v690_v45, %v691_v28  ;;  %v700_v41 = vshrl.u32 %v557_v17, 16 }
  0x5b   : > { %2524 = vmatprep.subr.bf16.mxu0 %v2653_v6  ;;  %v3283_v14 = vsel %vm3201_vm0, 0, %v698_v20  ;;  %v838_v60 = vsel %vm3201_vm0, 0, %v780_v25  ;;  %v2658_v61 = vld [vmem:[%s3386_s2 + $0x220] sm:$0xff]   ;;  %v569_v40 = vpack.c.bf16 %v3072_v11, %v3072_v11  ;;  %v573_v33 = vpack.c.bf16 %v3080_v21, %v3080_v21 }
  0x5c   : > { %v2338_v27 = vpack.c.bf16 %v3113_v51, %v3021_v31  ;;  %v702_v12 = vrot.slane %v700_v41, 7  ;;  %v703_v29 = vshll.u32 %v557_v17, 16  ;;  %v707_v35 = vshrl.u32 %v561_v24, 16 }
  0x5d   : > { %2515 = vmatmul.mubr.bf16.vlgmr.msra.gmra.mxu1 %v2271_v13  ;;  %v714_v43 = vshrl.u32 %v565_v22, 16  ;;  %v721_v49 = vshrl.u32 %v569_v40, 16  ;;  %v728_v3 = vshrl.u32 %v573_v33, 16  ;;  %v2341_v31 = vpack.c.bf16 %v3164_v44, %v3080_v21  ;;  %v2662_v21 = vld [vmem:[%s3386_s2 + $0x210] sm:$0xff]  }
  0x5e   : > { %2547 = vmatpush3.bf16.msra.mxu1 %v3176_v54  ;;  %2525 = vmatpush3.bf16.msra.mxu0 %v2653_v6  ;;  %v2339_v54 = vpack.c.bf16 %v3072_v11, %v2975_v62  ;;  %v2294_v62 = vcombine.low %v838_v60, %v3283_v14  ;;  %v2660_v11 = vld [vmem:[%s3386_s2 + $0x218] sm:$0xff]   ;;  %v705_v51 = vor.u32 %v703_v29, %v702_v12  ;;  %v709_v30 = vrot.slane %v707_v35, 7 }
  0x5f   : > { %2548 = vmatprep.subr.bf16.mxu1 %v2654_v7  ;;  %2526 = vmatprep.subr.bf16.mxu0 %v2655_v26  ;;  %v710_v23 = vshll.u32 %v561_v24, 16  ;;  %v581_v50 = vpack.c.bf16 %v3168_v52, %v3168_v52  ;;  %v716_v58 = vrot.slane %v714_v43, 7  ;;  %v717_v56 = vshll.u32 %v565_v22, 16 }
  0x60   : > { %2518 = vmatprep.mubr.bf16.mxu1 %v2272_v16  ;;  %v577_v57 = vpack.c.bf16 %v3164_v44, %v3164_v44  ;;  %v723_v63 = vrot.slane %v721_v49, 7  ;;  %v724_v55 = vshll.u32 %v569_v40, 16  ;;  %v730_v52 = vrot.slane %v728_v3, 7 }
  0x61   : > { %1482 = vmatmul.mubr.bf16.gmra.mxu0 %v2336_v36  ;;  %v731_v0 = vshll.u32 %v573_v33, 16  ;;  %v2340_v1 = vpack.c.bf16 %v3209_v10, %v3120_v53  ;;  %v712_v2 = vor.u32 %v710_v23, %v709_v30  ;;  %v757_v44 = vsel %vm3201_vm0, 0, %v705_v51 }
  0x62   : > { %2549 = vmatpush3.bf16.msra.mxu1 %v2654_v7  ;;  %2527 = vmatpush3.bf16.msra.mxu0 %v2655_v26  ;;  %v719_v46 = vor.u32 %v717_v56, %v716_v58  ;;  %v735_v6 = vshrl.u32 %v577_v57, 16  ;;  %v742_v18 = vshrl.u32 %v581_v50, 16  ;;  %v726_v53 = vor.u32 %v724_v55, %v723_v63  ;;  %v2666_v7 = vld [vmem:[%s3386_s2 + $0x200] sm:$0xff]  }
  0x63   : > { %2550 = vmatprep.subr.bf16.mxu1 %v2656_v4  ;;  %2528 = vmatprep.subr.bf16.mxu0 %v2657_v19  ;;  %v733_v10 = vor.u32 %v731_v0, %v730_v52  ;;  %v2282_v8 = vcombine.low %v3283_v14, %v757_v44  ;;  %v758_v13 = vsel %vm3201_vm0, 0, %v712_v2  ;;  %v738_v9 = vshll.u32 %v577_v57, 16 }
  0x64   : > { %1489 = vmatprep.mubr.bf16.mxu0 %v2339_v54  ;;  %v759_v42 = vsel %vm3201_vm0, 0, %v719_v46  ;;  %v737_v48 = vrot.slane %v735_v6, 7  ;;  %v744_v34 = vrot.slane %v742_v18, 7  ;;  %v745_v39 = vshll.u32 %v581_v50, 16 }
  0x65   : > { %2519 = vmatmul.mubr.bf16.gmra.mxu1 %v2273_v38  ;;  %v760_v26 = vsel %vm3201_vm0, 0, %v726_v53  ;;  %v761_v16 = vsel %vm3201_vm0, 0, %v733_v10  ;;  %v2283_v17 = vcombine.low %v758_v13, %v759_v42  ;;  %v2295_v45 = vcombine.low %v757_v44, %v758_v13 }
  0x66   : > { %2551 = vmatpush3.bf16.msra.mxu1 %v2656_v4  ;;  %2529 = vmatpush3.bf16.msra.mxu0 %v2657_v19  ;;  %v2284_v36 = vcombine.low %v760_v26, %v761_v16  ;;  %v740_v20 = vor.u32 %v738_v9, %v737_v48  ;;  %v747_v25 = vor.u32 %v745_v39, %v744_v34 }
  0x67   : > { %2552 = vmatprep.subr.bf16.mxu1 %v2658_v61  ;;  %2530 = vmatprep.subr.bf16.mxu0 %v2659_v32  ;;  %v2296_v28 = vcombine.low %v759_v42, %v760_v26 }
  0x68   : > { %2562 = vmatprep.mubr.bf16.mxu1 %v2294_v62  ;;  %v762_v4 = vsel %vm3201_vm0, 0, %v740_v20  ;;  %v763_v19 = vsel %vm3201_vm0, 0, %v747_v25 }
  0x69   : > { %1490 = vmatmul.mubr.bf16.gmra.mxu0 %v2338_v27  ;;  %v2285_v24 = vcombine.low %v762_v4, %v763_v19  ;;  %v2297_v54 = vcombine.low %v761_v16, %v762_v4 }
  0x6a   : > { %2553 = vmatpush3.bf16.msra.mxu1 %v2658_v61  ;;  %2531 = vmatpush3.bf16.msra.mxu0 %v2659_v32 }
  0x6b   : > { %2554 = vmatprep.subr.bf16.mxu1 %v2660_v11  ;;  %2532 = vmatprep.subr.bf16.mxu0 %v2661_v47 }
  0x6c   : > { %1497 = vmatprep.mubr.bf16.mxu0 %v2341_v31 }
  0x6e   : > { %2555 = vmatpush3.bf16.msra.mxu1 %v2660_v11  ;;  %2533 = vmatpush3.bf16.msra.mxu0 %v2661_v47 }
  0x6f   : > { %2556 = vmatprep.subr.bf16.mxu1 %v2662_v21  ;;  %2534 = vmatprep.subr.bf16.mxu0 %v2663_v59 }
  0x71   : > { %1498 = vmatmul.mubr.bf16.gmra.mxu0 %v2340_v1 }
  0x72   : > { %2557 = vmatpush3.bf16.msra.mxu1 %v2662_v21  ;;  %2535 = vmatpush3.bf16.msra.mxu0 %v2663_v59 }
  0x73   : > { %2558 = vmatprep.subr.bf16.mxu1 %v2664_v37  ;;  %2536 = vmatprep.subr.bf16.mxu0 %v2665_v5 }
  0x74   : > { %2538 = vmatprep.mubr.bf16.mxu0 %v2282_v8 }
  0x76   : > { %2559 = vmatpush3.bf16.msra.mxu1 %v2664_v37  ;;  %2537 = vmatpush3.bf16.msra.mxu0 %v2665_v5 }
  0x77   : > { %2560 = vmatprep.subr.bf16.mxu1 %v2666_v7 }
  0x79   : > { %2539 = vmatmul.mubr.bf16.vlgmr.msra.gmra.mxu0 %v2283_v17 }
  0x7a   : > { %2561 = vmatpush3.bf16.msra.mxu1 %v2666_v7  ;;  %2542 = vmatprep.mubr.bf16.mxu0 %v2284_v36 }
  0x7d   : > { %2563 = vmatmul.mubr.bf16.vlgmr.msra.gmra.mxu1 %v2295_v45 }
  0x7e   : > { %2566 = vmatprep.mubr.bf16.mxu1 %v2296_v28 }
  0x81   : > { %2543 = vmatmul.mubr.bf16.gmra.mxu0 %v2285_v24 }
  0x85   : > { %2567 = vmatmul.mubr.bf16.gmra.mxu1 %v2297_v54 }
  0xee   : > { %v2358_v38 = vpop.f32.mrf.mxu0 }
  0xef   : > { %v2398_v14 = vpop.f32.mrf.mxu1 }
  0xf0   : > { %v2359_v41 = vpop.f32.mrf.mxu0 }
  0xf1   : > { %v2399_v60 = vpop.f32.mrf.mxu1  ;;  %v2360_v7 = vadd.f32 %v2359_v41, %v2358_v38 }
  0xf2   : > { %v2361_v22 = vpop.f32.mrf.mxu0  ;;  %v2400_v26 = vadd.f32 %v2399_v60, %v2398_v14 }
  0xf3   : > { %v2401_v61 = vpop.f32.mrf.mxu1 }
  0xf4   : > { %v2362_v32 = vpop.f32.mrf.mxu0  ;;  %v1266_v24 = vadd.f32 %v2400_v26, %v2360_v7 }
  0xf5   : > { %v2402_v40 = vpop.f32.mrf.mxu1  ;;  %v2363_v28 = vadd.f32 %v2362_v32, %v2361_v22 }
  0xf6   : > { %v2364_v33 = vpop.f32.mrf.mxu0  ;;  %v2403_v54 = vadd.f32 %v2402_v40, %v2401_v61 }
  0xf8   : > { %v2365_v62 = vpop.f32.mrf.mxu0 }
  0xf9   : > { %v2404_v27 = vpop.f32.mrf.mxu1  ;;  %v2366_v42 = vadd.f32 %v2365_v62, %v2364_v33 }
  0xfa   : > { %v2367_v12 = vpop.f32.mrf.mxu0 }
  0xfb   : > { %v2405_v15 = vpop.f32.mrf.mxu1 }
  0xfc   : > { %v2368_v29 = vpop.f32.mrf.mxu0  ;;  %v2406_v48 = vadd.f32 %v2405_v15, %v2404_v27 }
  0xfd   : > { %v2407_v35 = vpop.f32.mrf.mxu1  ;;  %v2369_v20 = vadd.f32 %v2368_v29, %v2367_v12  ;;  %v1269_v29 = vadd.f32 %v2403_v54, %v2363_v28 }
  0xfe   : > { %v1274_v36 = vadd.f32 %v2406_v48, %v2366_v42 }
  0xff   : > { %v2408_v11 = vpop.f32.mrf.mxu1 }
 0x100   : > { %v2409_v25 = vadd.f32 %v2408_v11, %v2407_v35 }
 0x102   : > { %v1277_v27 = vadd.f32 %v2409_v25, %v2369_v20 }
 0x105   : > { %v2370_v43 = vpop.f32.mrf.mxu0 }
 0x107   : > { %v2371_v47 = vpop.f32.mrf.mxu0 }
 0x108   : > { %v2372_v41 = vadd.f32 %v2371_v47, %v2370_v43 }
 0x109   : > { %v2410_v49 = vpop.f32.mrf.mxu1  ;;  %v3346_v3 = vpop.f32.mrf.mxu0 }
 0x10b   : > { %v2411_v31 = vpop.f32.mrf.mxu1  ;;  %v3350_v30 = vpop.f32.mrf.mxu0 }
 0x10c   : > { %3393 = vst [vmem:[#allocation4_spill] sm:$0xff] %v3350_v30  ;;  %v2412_v14 = vadd.f32 %v2411_v31, %v2410_v49 }
 0x10d   : > { %v3348_v51 = vpop.f32.mrf.mxu1 }
 0x10e   : > { %3392 = vst [vmem:[#allocation3_spill] sm:$0xff] %v3348_v51 }
 0x10f   : > { %v3352_v23 = vpop.f32.mrf.mxu1 }
 0x110   : > { %3394 = vst [vmem:[#allocation5_spill] sm:$0xff] %v3352_v23 }
 0x111   : > { %v2376_v50 = vpop.f32.mrf.mxu0 }
 0x113   : > { %v2377_v58 = vpop.f32.mrf.mxu0 }
 0x114   : > { %v2378_v30 = vadd.f32 %v2377_v58, %v2376_v50 }
 0x115   : > { %v2416_v56 = vpop.f32.mrf.mxu1  ;;  %v2379_v57 = vpop.f32.mrf.mxu0  ;;  %v3396_v47 = vld [vmem:[#allocation3_spill] sm:$0xff] }
 0x117   : > { %v2417_v21 = vpop.f32.mrf.mxu1  ;;  %v2380_v59 = vpop.f32.mrf.mxu0  ;;  %v3397_v49 = vld [vmem:[#allocation5_spill] sm:$0xff] }
 0x118   : > { %v2418_v33 = vadd.f32 %v2417_v21, %v2416_v56  ;;  %v2381_v11 = vadd.f32 %v2380_v59, %v2379_v57  ;;  %v1282_v21 = vadd.f32 %v2412_v14, %v2372_v41  ;;  %v2415_v31 = vadd.f32 %v3397_v49, %v3396_v47 }
 0x119   : > { %v2419_v63 = vpop.f32.mrf.mxu1  ;;  %v2438_v55 = vpop.f32.mrf.mxu0 }
 0x11a   : > { %v1290_v32 = vadd.f32 %v2418_v33, %v2378_v30 }
 0x11b   : > { %v2439_v52 = vpop.f32.mrf.mxu0  ;;  %v2420_v0 = vpop.f32.mrf.mxu1 }
 0x11c   : > { %v2440_v45 = vadd.f32 %v2439_v52, %v2438_v55  ;;  %v2421_v61 = vadd.f32 %v2420_v0, %v2419_v63  ;;  %v3395_v52 = vld [vmem:[#allocation4_spill] sm:$0xff] }
 0x11d   : > { %v2441_v1 = vpop.f32.mrf.mxu0  ;;  %v2516_v44 = vpop.f32.mrf.mxu1  ;;  %v2375_v43 = vadd.f32 %v3395_v52, %v3346_v3 }
 0x11e   : > { %v1506_v15 = vadd.f32 %v2440_v45, %v1266_v24  ;;  %v1293_v59 = vadd.f32 %v2421_v61, %v2381_v11 }
 0x11f   : > { %v2442_v2 = vpop.f32.mrf.mxu0  ;;  %v1636_v18 = vpop.f32.mrf.mxu1 }
 0x120   : > { %v2443_v38 = vadd.f32 %v2442_v2, %v2441_v1  ;;  %v1667_v50 = vadd.f32 %v1636_v18, %v1506_v15 }
 0x121   : > { %v2444_v46 = vpop.f32.mrf.mxu0  ;;  %v2517_v53 = vpop.f32.mrf.mxu1 }
 0x122   : > { %v1507_v58 = vadd.f32 %v2443_v38, %v1269_v29 }
 0x123   : > { %v2445_v6 = vpop.f32.mrf.mxu0  ;;  %v1639_v13 = vpop.f32.mrf.mxu1 }
 0x124   : > { %v2446_v16 = vadd.f32 %v2445_v6, %v2444_v46  ;;  %v1668_v18 = vadd.f32 %v1639_v13, %v1507_v58 }
 0x125   : > { %v2447_v37 = vpop.f32.mrf.mxu0  ;;  %v2520_v34 = vpop.f32.mrf.mxu1 }
 0x126   : > { %v1508_v23 = vadd.f32 %v2446_v16, %v1274_v36 }
 0x127   : > { %v2448_v5 = vpop.f32.mrf.mxu0  ;;  %v1652_v4 = vpop.f32.mrf.mxu1 }
 0x128   : > { %v2449_v51 = vadd.f32 %v2448_v5, %v2447_v37  ;;  %v1669_v22 = vadd.f32 %v2516_v44, %v1508_v23  ;;  %v2306_v44 = vld [vmem:[%s3387_s3] ss:$0 sm:$0xff] }
 0x129   : > { %v2450_v10 = vpop.f32.mrf.mxu0  ;;  %v2521_v60 = vpop.f32.mrf.mxu1 }
 0x12a   : > { %v1509_v35 = vadd.f32 %v2449_v51, %v1277_v27 }
 0x12b   : > { %v2451_v8 = vpop.f32.mrf.mxu0  ;;  %v1655_v2 = vpop.f32.mrf.mxu1 }
 0x12c   : > { %v2452_v40 = vadd.f32 %v2451_v8, %v2450_v10  ;;  %v1670_v57 = vadd.f32 %v2517_v53, %v1509_v35  ;;  %v1285_v10 = vadd.f32 %v2415_v31, %v2375_v43 }
 0x12d   : > { %v2453_v9 = vpop.f32.mrf.mxu0 }
 0x12e   : > { %v1510_v63 = vadd.f32 %v2452_v40, %v1282_v21 }
 0x12f   : > { %v2454_v39 = vpop.f32.mrf.mxu0 }
 0x130   : > { %v2455_v3 = vadd.f32 %v2454_v39, %v2453_v9 }
 0x131   : > { %v2456_v17 = vpop.f32.mrf.mxu0 }
 0x132   : > { %v1511_v39 = vadd.f32 %v2455_v3, %v1285_v10 }
 0x133   : > { %v2457_v19 = vpop.f32.mrf.mxu0 }
 0x134   : > { %v2458_v46 = vadd.f32 %v2457_v19, %v2456_v17  ;;  %v1671_v17 = vadd.f32 %v1652_v4, %v1510_v63  ;;  %v1672_v4 = vadd.f32 %v1655_v2, %v1511_v39 }
 0x135   : > { %v2459_v62 = vpop.f32.mrf.mxu0 }
 0x136   : > { %v1512_v1 = vadd.f32 %v2458_v46, %v1290_v32 }
 0x137   : > { %v2460_v12 = vpop.f32.mrf.mxu0 }
 0x138   : > { %v2461_v23 = vadd.f32 %v2460_v12, %v2459_v62  ;;  %v1673_v42 = vadd.f32 %v2520_v34, %v1512_v1 }
 0x139   : > { %v2540_v55 = vpop.f32.mrf.mxu0 }
 0x13a   : > { %v1830_v56 = vadd.f32 %v2540_v55, %v1669_v22  ;;  %v1513_v48 = vadd.f32 %v2461_v23, %v1293_v59 }
 0x13b   : > { %v1797_v51 = vpop.f32.mrf.mxu0 }
 0x13c   : > { %v1828_v30 = vadd.f32 %v1797_v51, %v1667_v50  ;;  %v1674_v54 = vadd.f32 %v2521_v60, %v1513_v48 }
 0x13d   : > { %v2564_v0 = vpop.f32.mrf.mxu1  ;;  %v2541_v6 = vpop.f32.mrf.mxu0 }
 0x13e   : > { %v1991_v37 = vadd.f32 %v2564_v0, %v1830_v56  ;;  %v1831_v5 = vadd.f32 %v2541_v6, %v1670_v57 }
 0x13f   : > { %v1958_v53 = vpop.f32.mrf.mxu1  ;;  %v1800_v8 = vpop.f32.mrf.mxu0 }
 0x140   : > { %v2006_v7 = vadd.f32 %v2306_v44, %v1991_v37  ;;  %v1989_v26 = vadd.f32 %v1958_v53, %v1828_v30  ;;  %v1829_v16 = vadd.f32 %v1800_v8, %v1668_v18 }
 0x141   : > { %v2565_v13 = vpop.f32.mrf.mxu1  ;;  %v2544_v9 = vpop.f32.mrf.mxu0 }
 0x142   : > { %2014 = vst [vmem:[%s3365_s14 + $0x10] sm:$0xff] %v2006_v7  ;;  %v2004_v36 = vadd.f32 %v2306_v44, %v1989_v26  ;;  %v1992_v20 = vadd.f32 %v2565_v13, %v1831_v5  ;;  %v1834_v25 = vadd.f32 %v2544_v9, %v1673_v42 }
 0x143   : > { %v1961_v45 = vpop.f32.mrf.mxu1  ;;  %v1813_v28 = vpop.f32.mrf.mxu0 }
 0x144   : > { %2012 = vst [vmem:[%s3365_s14] sm:$0xff] %v2004_v36  ;;  %v2007_v19 = vadd.f32 %v2306_v44, %v1992_v20  ;;  %v1990_v24 = vadd.f32 %v1961_v45, %v1829_v16  ;;  %v1832_v34 = vadd.f32 %v1813_v28, %v1671_v17 }
 0x145   : > { %v2568_v33 = vpop.f32.mrf.mxu1  ;;  %v2545_v62 = vpop.f32.mrf.mxu0 }
 0x146   : > { %2015 = vst [vmem:[%s3365_s14 + $0x18] sm:$0xff] %v2007_v19  ;;  %v2005_v27 = vadd.f32 %v2306_v44, %v1990_v24  ;;  %v1995_v15 = vadd.f32 %v2568_v33, %v1834_v25  ;;  %v1835_v38 = vadd.f32 %v2545_v62, %v1674_v54 }
 0x147   : > { %v1974_v41 = vpop.f32.mrf.mxu1  ;;  %v1816_v14 = vpop.f32.mrf.mxu0 }
 0x148   : > { %2013 = vst [vmem:[%s3365_s14 + $0x8] sm:$0xff] %v2005_v27  ;;  %v2010_v46 = vadd.f32 %v2306_v44, %v1995_v15  ;;  %v1993_v12 = vadd.f32 %v1974_v41, %v1832_v34  ;;  %v1833_v29 = vadd.f32 %v1816_v14, %v1672_v4 }
 0x149   : > { %v2569_v35 = vpop.f32.mrf.mxu1 }
 0x14a   : > { %2018 = vst [vmem:[%s3365_s14 + $0x30] sm:$0xff] %v2010_v46  ;;  %v2008_v22 = vadd.f32 %v2306_v44, %v1993_v12  ;;  %v1996_v60 = vadd.f32 %v2569_v35, %v1835_v38 }
 0x14b   : > { %v1977_v32 = vpop.f32.mrf.mxu1 }
 0x14c   : > { %2016 = vst [vmem:[%s3365_s14 + $0x20] sm:$0xff] %v2008_v22  ;;  %v2011_v11 = vadd.f32 %v2306_v44, %v1996_v60  ;;  %v1994_v61 = vadd.f32 %v1977_v32, %v1833_v29 }
 0x14e   : > { %2019 = vst [vmem:[%s3365_s14 + $0x38] sm:$0xff] %v2011_v11  ;;  %v2009_v40 = vadd.f32 %v2306_v44, %v1994_v61 }
 0x150   : > { %2017 = vst [vmem:[%s3365_s14 + $0x28] sm:$0xff] %v2009_v40 }
 0x151 PF: > { %s16_s20 = sadd.s32 1, %s2689_s20   ;;  %s3398_s18 = smov %s2685_s19 }
 0x152   : > { %p13_p5 = scmp.ge.s32.totalorder %s16_s20, 4   ;;  %s3399_s19 = smov %s3401_s21 }
 0x154   :  { %15 = sbr.rel (!%p13_p5) target bundleno = 2 (0x2), region = 85 }

</bundles_post_ra>
